<compile_context>
chip_gen: v5e
topology: v5e:2x2
jax: 0.10.0
libtpu: 0.0.40
codegen_flags: <defaults>
</compile_context>

<pallas_src>
import functools

import jax
import jax.numpy as jnp
import numpy as np
from jax import lax
from jax.experimental import pallas as pl
from jax.experimental.pallas import tpu as pltpu


def _largest_divisor_leq(n, target, quantum=1):
    """Largest divisor of n that is <= target and a multiple of `quantum`.
    Falls back to n (full extent, always layout-legal) if none exists."""
    if n <= target and n % quantum == 0:
        return n
    for d in range(min(target, n), 0, -1):
        if n % d == 0 and d % quantum == 0:
            return d
    return n


# ----------------------------------------------------------------------------
# Pass 1: circular conv via per-tap MXU matmuls + per-block BN partial stats
# ----------------------------------------------------------------------------
def conv_stats_kernel(x_ref, w_ref, y_ref, stats_ref, *, n_adj):
    # x_ref:     (T, L, C)  activations (bf16 or f32)
    # w_ref:     (K, C, C)  per-tap weights, w_ref[k, ci, co] = w_torch[co, ci, k]
    # y_ref:     (T, L, C)  conv output (bf16 or f32)
    # stats_ref: (1, 2, C)  f32 partial (sum, sum-of-squares) for this block
    T, L, C = x_ref.shape
    K = 2 * n_adj + 1

    # Single unshifted LHS reused by every tap.
    x2 = x_ref[...].reshape(T * L, C)

    acc = None
    for k in range(K):                                   # K = 9, statically unrolled
        contrib = jnp.dot(x2, w_ref[k], preferred_element_type=jnp.float32)
        contrib = contrib.reshape(T, L, C)
        # roll(x, s) @ W == roll(x @ W, s): shift the per-tap result instead of
        # the input — keeps the rotate on 32-bit data in the XLU (slot has slack)
        # and avoids materializing K rolled copies of the activations.
        shift = (n_adj - k) % L
        if shift:
            contrib = pltpu.roll(contrib, shift, axis=1)
        acc = contrib if acc is None else acc + contrib

    y_ref[...] = acc.astype(y_ref.dtype)

    # One-pass partial BatchNorm statistics (training-mode batch stats), f32.
    s = jnp.sum(acc, axis=(0, 1), keepdims=True).reshape(1, C)
    ss = jnp.sum(acc * acc, axis=(0, 1), keepdims=True).reshape(1, C)
    stats_ref[...] = jnp.concatenate([s, ss], axis=0)[None, :, :]


# ----------------------------------------------------------------------------
# Pass 2: fused BatchNorm affine (precomputed scale/shift) + ReLU, elementwise
# ----------------------------------------------------------------------------
def bn_relu_kernel(y_ref, scale_ref, shift_ref, o_ref):
    y = y_ref[...].astype(jnp.float32)                   # (TM, C)
    out = jnp.maximum(y * scale_ref[...] + shift_ref[...], 0.0)
    o_ref[...] = out.astype(o_ref.dtype)


def cir_conv_pallas(tgt, w, b, gamma, beta, *, n_adj=4, eps=1e-5,
                    use_bf16=True, block_bn=None, block_rows=None):
    """CirConv forward.

    tgt:   (B, N, L, C)
    w:     (C_out, C_in, K) PyTorch Conv1d weight layout
    b:     (C,) conv bias — accepted for API parity; a per-channel constant added
           before *training-mode* BatchNorm is exactly cancelled by the mean
           subtraction, so it is unused here.
    gamma, beta: BatchNorm1d affine parameters.
    use_bf16: bf16 MXU operands + bf16 inter-pass intermediate (f32 accumulation
           and f32 statistics).  Set False for a bit-accurate f32 path.
    """
    del b
    B, N, L, C = tgt.shape
    BN = B * N
    K = 2 * n_adj + 1
    M = BN * L

    compute_dtype = jnp.bfloat16 if use_bf16 else tgt.dtype
    inter_dtype = jnp.bfloat16 if use_bf16 else jnp.float32

    x = tgt.reshape(BN, L, C).astype(compute_dtype)             # channels-last slab
    w_taps = jnp.transpose(w, (2, 1, 0)).astype(compute_dtype)  # (K, C_in, C_out)

    # --- pass-1 tiling: ~2048 rows (T*L) per block, >= 2 blocks when possible ---
    if block_bn is not None:
        T = block_bn
    else:
        cap = min(max(1, 2048 // L), max(1, BN // 2))   # >=2 blocks -> v7x megacore
        T = _largest_divisor_leq(BN, cap)
    assert BN % T == 0
    nblk = BN // T

    csz = np.dtype(compute_dtype).itemsize
    isz = np.dtype(inter_dtype).itemsize
    osz = np.dtype(tgt.dtype).itemsize

    conv_out, partial = pl.pallas_call(
        functools.partial(conv_stats_kernel, n_adj=n_adj),
        grid=(nblk,),
        in_specs=[
            pl.BlockSpec((T, L, C), lambda i: (i, 0, 0)),        # activations
            pl.BlockSpec((K, C, C), lambda i: (0, 0, 0)),        # weights (resident)
        ],
        out_specs=[
            pl.BlockSpec((T, L, C), lambda i: (i, 0, 0)),        # conv result
            pl.BlockSpec((1, 2, C), lambda i: (i, 0, 0)),        # partial stats
        ],
        out_shape=[
            jax.ShapeDtypeStruct((BN, L, C), inter_dtype),
            jax.ShapeDtypeStruct((nblk, 2, C), jnp.float32),
        ],
        cost_estimate=pl.CostEstimate(
            flops=2 * M * C * C * K,
            transcendentals=0,
            bytes_accessed=M * C * (csz + isz) + K * C * C * csz + nblk * 2 * C * 4,
        ),
        compiler_params=pltpu.CompilerParams(
            dimension_semantics=("parallel",),
            vmem_limit_bytes=32 * 1024 * 1024,
        ),
    )(x, w_taps)

    # --- finalize BatchNorm stats (tiny arrays, plain JAX) ----------------------
    s = jnp.sum(partial[:, 0, :], axis=0)
    ss = jnp.sum(partial[:, 1, :], axis=0)
    mean = s / M
    var = jnp.maximum(ss / M - mean * mean, 0.0)    # biased var; clamp cancellation
    inv = lax.rsqrt(var + eps)
    g = gamma.astype(jnp.float32)
    scale = (g * inv).reshape(1, C)
    shift = (beta.astype(jnp.float32) - mean * g * inv).reshape(1, C)

    # --- pass 2: normalize + ReLU over lane-dense (rows, C) tiles ---------------
    conv_flat = conv_out.reshape(M, C)
    if block_rows is not None:
        TM = block_rows
    else:
        cap = min(2048, max(8, M // 2))                 # >=2 blocks when possible
        TM = _largest_divisor_leq(M, cap, quantum=8)
    assert M % TM == 0

    # Reuse the intermediate's HBM buffer for the output when dtypes match.
    io_aliases = {0: 0} if np.dtype(inter_dtype) == np.dtype(tgt.dtype) else {}

    out = pl.pallas_call(
        bn_relu_kernel,
        grid=(M // TM,),
        in_specs=[
            pl.BlockSpec((TM, C), lambda i: (i, 0)),
            pl.BlockSpec((1, C), lambda i: (0, 0)),
            pl.BlockSpec((1, C), lambda i: (0, 0)),
        ],
        out_specs=pl.BlockSpec((TM, C), lambda i: (i, 0)),
        out_shape=jax.ShapeDtypeStruct((M, C), tgt.dtype),
        input_output_aliases=io_aliases,
        cost_estimate=pl.CostEstimate(
            flops=3 * M * C,
            transcendentals=0,
            bytes_accessed=M * C * (isz + osz) + 2 * C * 4,
        ),
        compiler_params=pltpu.CompilerParams(
            dimension_semantics=("parallel",),
            vmem_limit_bytes=32 * 1024 * 1024,
        ),
    )(conv_flat, scale, shift)

    return out.reshape(B, N, L, C)


def cir_conv_reference(tgt, w, b, gamma, beta, *, n_adj=4, eps=1e-5):
    """Pure-JAX reference mirroring the PyTorch (NCL) formulation."""
    B, N, L, C = tgt.shape
    x = tgt.reshape(B * N, L, C).transpose(0, 2, 1)              # (BN, C, L)
    xpad = jnp.concatenate([x[..., L - n_adj:], x, x[..., :n_adj]], axis=-1)
    y = lax.conv_general_dilated(
        xpad, w, window_strides=(1,), padding="VALID",
        dimension_numbers=("NCH", "OIH", "NCH"))
    y = y + b[None, :, None]
    mean = y.mean(axis=(0, 2), keepdims=True)
    var = jnp.mean(jnp.square(y - mean), axis=(0, 2), keepdims=True)
    y = (y - mean) / jnp.sqrt(var + eps)
    y = y * gamma[None, :, None] + beta[None, :, None]
    y = jnp.maximum(y, 0.0)
    return y.transpose(0, 2, 1).reshape(B, N, L, C)


if __name__ == "__main__":
    # Small shapes consistent with the module's forward: (B, N, L, d_model).
    B, N, L, D = 2, 4, 16, 128
    N_ADJ = 4
    K = 2 * N_ADJ + 1

    key = jax.random.PRNGKey(0)
    k_x, k_w, k_b, k_g, k_be = jax.random.split(key, 5)

    tgt = jax.random.normal(k_x, (B, N, L, D), dtype=jnp.float32)
    # conv.weight ~ N(0, 0.01) as in __init__; nonzero bias / non-trivial BN
    # params to exercise every path (the bias is provably cancelled by the
    # training-mode BatchNorm; the reference applies it explicitly).
    w = 0.01 * jax.random.normal(k_w, (D, D, K), dtype=jnp.float32)
    b = 0.1 * jax.random.normal(k_b, (D,), dtype=jnp.float32)
    gamma = 1.0 + 0.1 * jax.random.normal(k_g, (D,), dtype=jnp.float32)
    beta = 0.1 * jax.random.normal(k_be, (D,), dtype=jnp.float32)

    ref = jax.block_until_ready(
        cir_conv_reference(tgt, w, b, gamma, beta, n_adj=N_ADJ))

    # Exact-precision path (f32 MXU operands + f32 intermediate): tight check.
    fn_f32 = jax.jit(functools.partial(cir_conv_pallas, n_adj=N_ADJ, use_bf16=False))
    out_f32 = jax.block_until_ready(fn_f32(tgt, w, b, gamma, beta))
    assert out_f32.shape == tgt.shape and out_f32.dtype == tgt.dtype
    np.testing.assert_allclose(np.asarray(out_f32), np.asarray(ref),
                               rtol=5e-4, atol=5e-4)

    # Fast path (bf16 MXU operands + bf16 intermediate, f32 stats): relaxed check
    # (bf16 mantissa ~2^-9; BN renormalization keeps errors at the few-1e-3 level).
    fn_bf16 = jax.jit(functools.partial(cir_conv_pallas, n_adj=N_ADJ, use_bf16=True))
    out = jax.block_until_ready(fn_bf16(tgt, w, b, gamma, beta))
    assert out.shape == tgt.shape and out.dtype == tgt.dtype
    np.testing.assert_allclose(np.asarray(out), np.asarray(ref),
                               rtol=3e-2, atol=3e-2)

    print("KERNEL_OK")
</pallas_src>

<mosaic_0001>
module attributes {stable_mosaic.version = 11 : i64} {
  func.func @conv_stats_kernel(%arg0: i32, %arg1: memref<4x16x128xf32, #tpu.memory_space<vmem>>, %arg2: memref<9x128x128xf32, #tpu.memory_space<vmem>>, %arg3: memref<4x16x128xf32, #tpu.memory_space<vmem>>, %arg4: memref<1x2x128xf32, #tpu.memory_space<vmem>>) attributes {dimension_semantics = [#tpu.dimension_semantics<parallel>], iteration_bounds = array<i64: 2>, scalar_prefetch = 0 : i64, scratch_operands = 0 : i64, tpu.core_type = #tpu.core_type<tc>, window_params = [{transform_indices = @transform_0, window_bounds = array<i64: 4, 16, 128>}, {pipeline_mode = #tpu.pipeline_mode<synchronous>, transform_indices = @transform_1, window_bounds = array<i64: 9, 128, 128>}, {transform_indices = @transform_2, window_bounds = array<i64: 4, 16, 128>}, {transform_indices = @transform_3, window_bounds = array<i64: 1, 2, 128>}]} {
    %c0 = arith.constant 0 : index
    %c0_0 = arith.constant 0 : index
    %c0_1 = arith.constant 0 : index
    %0 = vector.load %arg1[%c0, %c0_0, %c0_1] : memref<4x16x128xf32, #tpu.memory_space<vmem>>, vector<4x16x128xf32>
    %1 = vector.shape_cast %0 : vector<4x16x128xf32> to vector<64x128xf32>
    %c0_2 = arith.constant 0 : index
    %c0_3 = arith.constant 0 : index
    %c0_4 = arith.constant 0 : index
    %2 = vector.load %arg2[%c0_2, %c0_3, %c0_4] : memref<9x128x128xf32, #tpu.memory_space<vmem>>, vector<1x128x128xf32>
    %3 = vector.shape_cast %2 : vector<1x128x128xf32> to vector<128x128xf32>
    %cst = arith.constant dense<0.000000e+00> : vector<64x128xf32>
    %4 = tpu.matmul %1, %3, %cst {dimension_numbers = #tpu.dot_dimension_numbers<[1], [0], [0], [1], [0, 0, 1, 1], [], []>} : vector<64x128xf32>, vector<128x128xf32>, vector<64x128xf32> -> vector<64x128xf32>
    %5 = vector.shape_cast %4 : vector<64x128xf32> to vector<4x16x128xf32>
    %c4_i32 = arith.constant 4 : i32
    %6 = tpu.dynamic_rotate %5 by %c4_i32 dim 1 : vector<4x16x128xf32>, i32 -> vector<4x16x128xf32>
    %c1 = arith.constant 1 : index
    %c0_5 = arith.constant 0 : index
    %c0_6 = arith.constant 0 : index
    %7 = vector.load %arg2[%c1, %c0_5, %c0_6] : memref<9x128x128xf32, #tpu.memory_space<vmem>>, vector<1x128x128xf32>
    %8 = vector.shape_cast %7 : vector<1x128x128xf32> to vector<128x128xf32>
    %cst_7 = arith.constant dense<0.000000e+00> : vector<64x128xf32>
    %9 = tpu.matmul %1, %8, %cst_7 {dimension_numbers = #tpu.dot_dimension_numbers<[1], [0], [0], [1], [0, 0, 1, 1], [], []>} : vector<64x128xf32>, vector<128x128xf32>, vector<64x128xf32> -> vector<64x128xf32>
    %10 = vector.shape_cast %9 : vector<64x128xf32> to vector<4x16x128xf32>
    %c3_i32 = arith.constant 3 : i32
    %11 = tpu.dynamic_rotate %10 by %c3_i32 dim 1 : vector<4x16x128xf32>, i32 -> vector<4x16x128xf32>
    %12 = arith.addf %6, %11 : vector<4x16x128xf32>
    %c2 = arith.constant 2 : index
    %c0_8 = arith.constant 0 : index
    %c0_9 = arith.constant 0 : index
    %13 = vector.load %arg2[%c2, %c0_8, %c0_9] : memref<9x128x128xf32, #tpu.memory_space<vmem>>, vector<1x128x128xf32>
    %14 = vector.shape_cast %13 : vector<1x128x128xf32> to vector<128x128xf32>
    %cst_10 = arith.constant dense<0.000000e+00> : vector<64x128xf32>
    %15 = tpu.matmul %1, %14, %cst_10 {dimension_numbers = #tpu.dot_dimension_numbers<[1], [0], [0], [1], [0, 0, 1, 1], [], []>} : vector<64x128xf32>, vector<128x128xf32>, vector<64x128xf32> -> vector<64x128xf32>
    %16 = vector.shape_cast %15 : vector<64x128xf32> to vector<4x16x128xf32>
    %c2_i32 = arith.constant 2 : i32
    %17 = tpu.dynamic_rotate %16 by %c2_i32 dim 1 : vector<4x16x128xf32>, i32 -> vector<4x16x128xf32>
    %18 = arith.addf %12, %17 : vector<4x16x128xf32>
    %c3 = arith.constant 3 : index
    %c0_11 = arith.constant 0 : index
    %c0_12 = arith.constant 0 : index
    %19 = vector.load %arg2[%c3, %c0_11, %c0_12] : memref<9x128x128xf32, #tpu.memory_space<vmem>>, vector<1x128x128xf32>
    %20 = vector.shape_cast %19 : vector<1x128x128xf32> to vector<128x128xf32>
    %cst_13 = arith.constant dense<0.000000e+00> : vector<64x128xf32>
    %21 = tpu.matmul %1, %20, %cst_13 {dimension_numbers = #tpu.dot_dimension_numbers<[1], [0], [0], [1], [0, 0, 1, 1], [], []>} : vector<64x128xf32>, vector<128x128xf32>, vector<64x128xf32> -> vector<64x128xf32>
    %22 = vector.shape_cast %21 : vector<64x128xf32> to vector<4x16x128xf32>
    %c1_i32 = arith.constant 1 : i32
    %23 = tpu.dynamic_rotate %22 by %c1_i32 dim 1 : vector<4x16x128xf32>, i32 -> vector<4x16x128xf32>
    %24 = arith.addf %18, %23 : vector<4x16x128xf32>
    %c4 = arith.constant 4 : index
    %c0_14 = arith.constant 0 : index
    %c0_15 = arith.constant 0 : index
    %25 = vector.load %arg2[%c4, %c0_14, %c0_15] : memref<9x128x128xf32, #tpu.memory_space<vmem>>, vector<1x128x128xf32>
    %26 = vector.shape_cast %25 : vector<1x128x128xf32> to vector<128x128xf32>
    %cst_16 = arith.constant dense<0.000000e+00> : vector<64x128xf32>
    %27 = tpu.matmul %1, %26, %cst_16 {dimension_numbers = #tpu.dot_dimension_numbers<[1], [0], [0], [1], [0, 0, 1, 1], [], []>} : vector<64x128xf32>, vector<128x128xf32>, vector<64x128xf32> -> vector<64x128xf32>
    %28 = vector.shape_cast %27 : vector<64x128xf32> to vector<4x16x128xf32>
    %29 = arith.addf %24, %28 : vector<4x16x128xf32>
    %c5 = arith.constant 5 : index
    %c0_17 = arith.constant 0 : index
    %c0_18 = arith.constant 0 : index
    %30 = vector.load %arg2[%c5, %c0_17, %c0_18] : memref<9x128x128xf32, #tpu.memory_space<vmem>>, vector<1x128x128xf32>
    %31 = vector.shape_cast %30 : vector<1x128x128xf32> to vector<128x128xf32>
    %cst_19 = arith.constant dense<0.000000e+00> : vector<64x128xf32>
    %32 = tpu.matmul %1, %31, %cst_19 {dimension_numbers = #tpu.dot_dimension_numbers<[1], [0], [0], [1], [0, 0, 1, 1], [], []>} : vector<64x128xf32>, vector<128x128xf32>, vector<64x128xf32> -> vector<64x128xf32>
    %33 = vector.shape_cast %32 : vector<64x128xf32> to vector<4x16x128xf32>
    %c15_i32 = arith.constant 15 : i32
    %34 = tpu.dynamic_rotate %33 by %c15_i32 dim 1 : vector<4x16x128xf32>, i32 -> vector<4x16x128xf32>
    %35 = arith.addf %29, %34 : vector<4x16x128xf32>
    %c6 = arith.constant 6 : index
    %c0_20 = arith.constant 0 : index
    %c0_21 = arith.constant 0 : index
    %36 = vector.load %arg2[%c6, %c0_20, %c0_21] : memref<9x128x128xf32, #tpu.memory_space<vmem>>, vector<1x128x128xf32>
    %37 = vector.shape_cast %36 : vector<1x128x128xf32> to vector<128x128xf32>
    %cst_22 = arith.constant dense<0.000000e+00> : vector<64x128xf32>
    %38 = tpu.matmul %1, %37, %cst_22 {dimension_numbers = #tpu.dot_dimension_numbers<[1], [0], [0], [1], [0, 0, 1, 1], [], []>} : vector<64x128xf32>, vector<128x128xf32>, vector<64x128xf32> -> vector<64x128xf32>
    %39 = vector.shape_cast %38 : vector<64x128xf32> to vector<4x16x128xf32>
    %c14_i32 = arith.constant 14 : i32
    %40 = tpu.dynamic_rotate %39 by %c14_i32 dim 1 : vector<4x16x128xf32>, i32 -> vector<4x16x128xf32>
    %41 = arith.addf %35, %40 : vector<4x16x128xf32>
    %c7 = arith.constant 7 : index
    %c0_23 = arith.constant 0 : index
    %c0_24 = arith.constant 0 : index
    %42 = vector.load %arg2[%c7, %c0_23, %c0_24] : memref<9x128x128xf32, #tpu.memory_space<vmem>>, vector<1x128x128xf32>
    %43 = vector.shape_cast %42 : vector<1x128x128xf32> to vector<128x128xf32>
    %cst_25 = arith.constant dense<0.000000e+00> : vector<64x128xf32>
    %44 = tpu.matmul %1, %43, %cst_25 {dimension_numbers = #tpu.dot_dimension_numbers<[1], [0], [0], [1], [0, 0, 1, 1], [], []>} : vector<64x128xf32>, vector<128x128xf32>, vector<64x128xf32> -> vector<64x128xf32>
    %45 = vector.shape_cast %44 : vector<64x128xf32> to vector<4x16x128xf32>
    %c13_i32 = arith.constant 13 : i32
    %46 = tpu.dynamic_rotate %45 by %c13_i32 dim 1 : vector<4x16x128xf32>, i32 -> vector<4x16x128xf32>
    %47 = arith.addf %41, %46 : vector<4x16x128xf32>
    %c8 = arith.constant 8 : index
    %c0_26 = arith.constant 0 : index
    %c0_27 = arith.constant 0 : index
    %48 = vector.load %arg2[%c8, %c0_26, %c0_27] : memref<9x128x128xf32, #tpu.memory_space<vmem>>, vector<1x128x128xf32>
    %49 = vector.shape_cast %48 : vector<1x128x128xf32> to vector<128x128xf32>
    %cst_28 = arith.constant dense<0.000000e+00> : vector<64x128xf32>
    %50 = tpu.matmul %1, %49, %cst_28 {dimension_numbers = #tpu.dot_dimension_numbers<[1], [0], [0], [1], [0, 0, 1, 1], [], []>} : vector<64x128xf32>, vector<128x128xf32>, vector<64x128xf32> -> vector<64x128xf32>
    %51 = vector.shape_cast %50 : vector<64x128xf32> to vector<4x16x128xf32>
    %c12_i32 = arith.constant 12 : i32
    %52 = tpu.dynamic_rotate %51 by %c12_i32 dim 1 : vector<4x16x128xf32>, i32 -> vector<4x16x128xf32>
    %53 = arith.addf %47, %52 : vector<4x16x128xf32>
    %c0_29 = arith.constant 0 : index
    %c0_30 = arith.constant 0 : index
    %c0_31 = arith.constant 0 : index
    %54 = vector.load %arg3[%c0_29, %c0_30, %c0_31] : memref<4x16x128xf32, #tpu.memory_space<vmem>>, vector<4x16x128xf32>
    tpu.vector_store %arg3[%c0_29, %c0_30, %c0_31], %53 {strides = array<i32>} : memref<4x16x128xf32, #tpu.memory_space<vmem>>, vector<4x16x128xf32>,
    %cst_32 = arith.constant dense<0.000000e+00> : vector<128xf32>
    %55 = vector.multi_reduction <add>, %53, %cst_32 [0, 1] : vector<4x16x128xf32> to vector<128xf32>
    %56 = vector.shape_cast %55 : vector<128xf32> to vector<1x1x128xf32>
    %57 = vector.shape_cast %56 : vector<1x1x128xf32> to vector<1x128xf32>
    %58 = arith.mulf %53, %53 : vector<4x16x128xf32>
    %cst_33 = arith.constant dense<0.000000e+00> : vector<128xf32>
    %59 = vector.multi_reduction <add>, %58, %cst_33 [0, 1] : vector<4x16x128xf32> to vector<128xf32>
    %60 = vector.shape_cast %59 : vector<128xf32> to vector<1x1x128xf32>
    %61 = vector.shape_cast %60 : vector<1x1x128xf32> to vector<1x128xf32>
    %62 = tpu.concatenate %57, %61 in 0 : vector<1x128xf32>, vector<1x128xf32> -> vector<2x128xf32>
    %63 = vector.shape_cast %62 : vector<2x128xf32> to vector<1x2x128xf32>
    %c0_34 = arith.constant 0 : index
    %c0_35 = arith.constant 0 : index
    %c0_36 = arith.constant 0 : index
    %64 = vector.load %arg4[%c0_34, %c0_35, %c0_36] : memref<1x2x128xf32, #tpu.memory_space<vmem>>, vector<1x2x128xf32>
    tpu.vector_store %arg4[%c0_34, %c0_35, %c0_36], %63 {strides = array<i32>} : memref<1x2x128xf32, #tpu.memory_space<vmem>>, vector<1x2x128xf32>,
    return
  }
  func.func @transform_0(%arg0: i32) -> (i32, i32, i32) {
    %c0_i32 = arith.constant 0 : i32
    %c0_i32_0 = arith.constant 0 : i32
    %c0_i32_1 = arith.constant 0 : i32
    return %arg0, %c0_i32, %c0_i32_0 : i32, i32, i32
  }
  func.func @transform_1(%arg0: i32) -> (i32, i32, i32) {
    %c0_i32 = arith.constant 0 : i32
    %c0_i32_0 = arith.constant 0 : i32
    %c0_i32_1 = arith.constant 0 : i32
    %c0_i32_2 = arith.constant 0 : i32
    return %c0_i32, %c0_i32_0, %c0_i32_1 : i32, i32, i32
  }
  func.func @transform_2(%arg0: i32) -> (i32, i32, i32) {
    %c0_i32 = arith.constant 0 : i32
    %c0_i32_0 = arith.constant 0 : i32
    %c0_i32_1 = arith.constant 0 : i32
    return %arg0, %c0_i32, %c0_i32_0 : i32, i32, i32
  }
  func.func @transform_3(%arg0: i32) -> (i32, i32, i32) {
    %c0_i32 = arith.constant 0 : i32
    %c0_i32_0 = arith.constant 0 : i32
    %c0_i32_1 = arith.constant 0 : i32
    return %arg0, %c0_i32, %c0_i32_0 : i32, i32, i32
  }
}

module attributes {stable_mosaic.version = 11 : i64} {
  func.func @bn_relu_kernel(%arg0: i32, %arg1: memref<64x128xf32, #tpu.memory_space<vmem>>, %arg2: memref<1x128xf32, #tpu.memory_space<vmem>>, %arg3: memref<1x128xf32, #tpu.memory_space<vmem>>, %arg4: memref<64x128xf32, #tpu.memory_space<vmem>>) attributes {dimension_semantics = [#tpu.dimension_semantics<parallel>], iteration_bounds = array<i64: 2>, scalar_prefetch = 0 : i64, scratch_operands = 0 : i64, tpu.core_type = #tpu.core_type<tc>, window_params = [{transform_indices = @transform_0, window_bounds = array<i64: 64, 128>}, {pipeline_mode = #tpu.pipeline_mode<synchronous>, transform_indices = @transform_1, window_bounds = array<i64: 1, 128>}, {pipeline_mode = #tpu.pipeline_mode<synchronous>, transform_indices = @transform_2, window_bounds = array<i64: 1, 128>}, {transform_indices = @transform_3, window_bounds = array<i64: 64, 128>}]} {
    %c0 = arith.constant 0 : index
    %c0_0 = arith.constant 0 : index
    %0 = vector.load %arg1[%c0, %c0_0] : memref<64x128xf32, #tpu.memory_space<vmem>>, vector<64x128xf32>
    %c0_1 = arith.constant 0 : index
    %c0_2 = arith.constant 0 : index
    %1 = vector.load %arg2[%c0_1, %c0_2] : memref<1x128xf32, #tpu.memory_space<vmem>>, vector<1x128xf32>
    %2 = vector.broadcast %1 : vector<1x128xf32> to vector<64x128xf32>
    %3 = arith.mulf %0, %2 : vector<64x128xf32>
    %c0_3 = arith.constant 0 : index
    %c0_4 = arith.constant 0 : index
    %4 = vector.load %arg3[%c0_3, %c0_4] : memref<1x128xf32, #tpu.memory_space<vmem>>, vector<1x128xf32>
    %5 = vector.broadcast %4 : vector<1x128xf32> to vector<64x128xf32>
    %6 = arith.addf %3, %5 : vector<64x128xf32>
    %cst = arith.constant 0.000000e+00 : f32
    %7 = vector.broadcast %cst : f32 to vector<64x128xf32>
    %8 = arith.maximumf %6, %7 : vector<64x128xf32>
    %c0_5 = arith.constant 0 : index
    %c0_6 = arith.constant 0 : index
    %9 = vector.load %arg4[%c0_5, %c0_6] : memref<64x128xf32, #tpu.memory_space<vmem>>, vector<64x128xf32>
    tpu.vector_store %arg4[%c0_5, %c0_6], %8 {strides = array<i32>} : memref<64x128xf32, #tpu.memory_space<vmem>>, vector<64x128xf32>,
    return
  }
  func.func @transform_0(%arg0: i32) -> (i32, i32) {
    %c0_i32 = arith.constant 0 : i32
    %c0_i32_0 = arith.constant 0 : i32
    return %arg0, %c0_i32 : i32, i32
  }
  func.func @transform_1(%arg0: i32) -> (i32, i32) {
    %c0_i32 = arith.constant 0 : i32
    %c0_i32_0 = arith.constant 0 : i32
    %c0_i32_1 = arith.constant 0 : i32
    return %c0_i32, %c0_i32_0 : i32, i32
  }
  func.func @transform_2(%arg0: i32) -> (i32, i32) {
    %c0_i32 = arith.constant 0 : i32
    %c0_i32_0 = arith.constant 0 : i32
    %c0_i32_1 = arith.constant 0 : i32
    return %c0_i32, %c0_i32_0 : i32, i32
  }
  func.func @transform_3(%arg0: i32) -> (i32, i32) {
    %c0_i32 = arith.constant 0 : i32
    %c0_i32_0 = arith.constant 0 : i32
    return %arg0, %c0_i32 : i32, i32
  }
}

</mosaic_0001>

<bundles_post_ra>
// kernel: cir_conv_pallas.3
= control target key start
LH: loop header
LB: loop body
LE: loop exit
PB: predicated region body
PF: predicated region fallthrough
CT: control target
= control target key end

     0   :  { %s327_s12 = smov 0   ;;  %s350_s0 = inlined_call_operand.vmem [shape: f32[128,128], index: 0, kind: input, shape index: {}, may-alias: {0,3}]   ;;  %s351_s1 = inlined_call_operand.vmem [shape: f32[1,128], index: 1, kind: input, shape index: {}]   ;;  %s352_s2 = inlined_call_operand.vmem [shape: f32[1,128], index: 2, kind: input, shape index: {}]   ;;  %s353_s3 = inlined_call_operand.vmem [shape: f32[128,128], index: 3, kind: output, shape index: {}, may-alias: {0,3}]  }
   0x1 LB: > { %s278_s13 = sadd.s32 4294967295, %s305_s12   ;;  %p282_p0 = scmp.ge.s32.totalorder %s305_s12, 1  ;;  %s305_s12 = sphi %s327_s12, %s13_s12  }
   0x2   : > { %p138_p1 = scmp.lt.s32.totalorder %s305_s12, 3 }
   0x4   : > { %p139_p2 = pnand %p282_p0, %p138_p1 }
   0x5   : > { %s283_s14 = sshll.u32 (!%p139_p2), %s278_s13, 3 }
   0x6   : > { %142 = sbr.rel (%p139_p2) target bundleno = 29 (0x1d), region = 32  ;;  %p163_p3 = scmp.lt.s32.totalorder (!%p139_p2), %s283_s14, 15 }
   0xb   : > { %s355_s14 = smov (!%p163_p3, %s283_s14), 15  ;;  %v297_v0 = vld [vmem:[%s351_s1] ss:$0 sm:$0xff] }
   0xc   : > { %s284_s17 = sshll.u32 %s355_s14, 3  ;;  %v298_v1 = vld [vmem:[%s352_s2] ss:$0 sm:$0xff] }
   0xd   : > { %s166_s20 = scalar_lea.vmem %s350_s0, %s284_s17  ;;  %s172_s25 = scalar_lea.vmem %s353_s3, %s284_s17 }
   0xe   : > { %v174_v2 = vld [vmem:[%s166_s20] sm:$0xff]  ;;  %v175_v3 = vld [vmem:[%s166_s20 + $0x8] sm:$0xff]  ;;  %v176_v4 = vld [vmem:[%s166_s20 + $0x10] sm:$0xff] }
   0xf   : > { %v177_v5 = vld [vmem:[%s166_s20 + $0x18] sm:$0xff]  ;;  %v178_v6 = vld [vmem:[%s166_s20 + $0x20] sm:$0xff]  ;;  %v179_v7 = vld [vmem:[%s166_s20 + $0x28] sm:$0xff]  ;;  %v186_v8 = vmul.f32 %v297_v0, %v174_v2  ;;  %v187_v9 = vmul.f32 %v297_v0, %v175_v3  ;;  %v188_v10 = vmul.f32 %v297_v0, %v176_v4 }
  0x10   : > { %v180_v11 = vld [vmem:[%s166_s20 + $0x30] sm:$0xff]  ;;  %v181_v12 = vld [vmem:[%s166_s20 + $0x38] sm:$0xff]  ;;  %v189_v13 = vmul.f32 %v297_v0, %v177_v5  ;;  %v190_v14 = vmul.f32 %v297_v0, %v178_v6  ;;  %v191_v15 = vmul.f32 %v297_v0, %v179_v7 }
  0x11   : > { %v192_v16 = vmul.f32 %v297_v0, %v180_v11  ;;  %v193_v17 = vmul.f32 %v297_v0, %v181_v12  ;;  %v198_v18 = vadd.f32 %v298_v1, %v186_v8  ;;  %v199_v19 = vadd.f32 %v298_v1, %v187_v9 }
  0x12   : > { %v200_v20 = vadd.f32 %v298_v1, %v188_v10  ;;  %v201_v21 = vadd.f32 %v298_v1, %v189_v13  ;;  %v202_v22 = vadd.f32 %v298_v1, %v190_v14  ;;  %v203_v23 = vadd.f32 %v298_v1, %v191_v15 }
  0x13   : > { %v204_v24 = vadd.f32 %v298_v1, %v192_v16  ;;  %v206_v25 = vmax.f32 %v198_v18, 0.0  ;;  %v207_v26 = vmax.f32 %v199_v19, 0.0  ;;  %v205_v27 = vadd.f32 %v298_v1, %v193_v17 }
  0x14   : > { %v208_v28 = vmax.f32 %v200_v20, 0.0  ;;  %v209_v29 = vmax.f32 %v201_v21, 0.0  ;;  %v210_v30 = vmax.f32 %v202_v22, 0.0  ;;  %v211_v31 = vmax.f32 %v203_v23, 0.0 }
  0x15   : > { %214 = vst [vmem:[%s172_s25] sm:$0xff] %v206_v25  ;;  %v212_v32 = vmax.f32 %v204_v24, 0.0  ;;  %v213_v33 = vmax.f32 %v205_v27, 0.0 }
  0x16   : > { %215 = vst [vmem:[%s172_s25 + $0x8] sm:$0xff] %v207_v26 }
  0x17   : > { %216 = vst [vmem:[%s172_s25 + $0x10] sm:$0xff] %v208_v28 }
  0x18   : > { %217 = vst [vmem:[%s172_s25 + $0x18] sm:$0xff] %v209_v29 }
  0x19   : > { %218 = vst [vmem:[%s172_s25 + $0x20] sm:$0xff] %v210_v30 }
  0x1a   : > { %219 = vst [vmem:[%s172_s25 + $0x28] sm:$0xff] %v211_v31 }
  0x1b   : > { %220 = vst [vmem:[%s172_s25 + $0x30] sm:$0xff] %v212_v32 }
  0x1c   : > { %221 = vst [vmem:[%s172_s25 + $0x38] sm:$0xff] %v213_v33 }
  0x1d PF: > { %s13_s12 = sadd.s32 1, %s305_s12  }
  0x1e   : > { %p10_p4 = scmp.ge.s32.totalorder %s13_s12, 4  }
  0x20   :  { %12 = sbr.rel (!%p10_p4) target bundleno = 1 (0x1), region = 62 }

// kernel: cir_conv_pallas.2
= control target key start
LH: loop header
LB: loop body
LE: loop exit
PB: predicated region body
PF: predicated region fallthrough
CT: control target
= control target key end

     0   :  { %s1266_s12 = smov 0   ;;  %s2070_s0 = inlined_call_operand.vmem [shape: f32[8,16,128], index: 0, kind: input, shape index: {}]   ;;  %s2071_s1 = inlined_call_operand.vmem [shape: f32[9,128,128], index: 1, kind: input, shape index: {}]   ;;  %s2072_s2 = inlined_call_operand.vmem [shape: f32[8,16,128], index: 2, kind: output, shape index: {0}]   ;;  %s2073_s3 = inlined_call_operand.vmem [shape: f32[2,2,128], index: 3, kind: output, shape index: {1}]  }
   0x1 LB: > { %s1272_s13 = sadd.s32 4294967295, %s1244_s12   ;;  %p1058_p0 = scmp.ge.s32.totalorder %s1244_s12, 1  ;;  %s1244_s12 = sphi %s1266_s12, %s14_s12  }
   0x2   : > { %p142_p1 = scmp.lt.s32.totalorder %s1244_s12, 3 }
   0x4   : > { %p143_p2 = pnand %p1058_p0, %p142_p1 }
   0x5   : > { %s1059_s27 = sshll.u32 (!%p143_p2), %s1272_s13, 2  ;;  %p186_p4 = scmp.lt.s32.totalorder (!%p143_p2), %s1272_s13, 1 }
   0x6   : > { %146 = sbr.rel (%p143_p2) target bundleno = 352 (0x160), region = 28  ;;  %p1346_p3 = scmp.lt.s32.totalorder (!%p143_p2), %s1059_s27, 7 }
   0xb   : > { %v213_v0 = vld [vmem:[%s2071_s1 + $0x78] sm:$0xff]  ;;  %v212_v1 = vld [vmem:[%s2071_s1 + $0x70] sm:$0xff]  ;;  %v211_v3 = vld [vmem:[%s2071_s1 + $0x68] sm:$0xff]  ;;  %s2076_s27 = smov (!%p1346_p3, %s1059_s27), 7  ;;  %s2078_s13 = smov (!%p186_p4, %s1272_s13), 1  ;;  %vm962_vm7 = vcmask 1040384  }
   0xc   : > { %1198 = vmatpush.msra.mxu1 %v213_v0  ;;  %214 = vmatpush.msra.mxu0 %v213_v0  ;;  %v1097_v2 = vld [vmem:[%s2071_s1 + $0x178] sm:$0xff]  ;;  %v1096_v4 = vld [vmem:[%s2071_s1 + $0x170] sm:$0xff]  ;;  %v1095_v5 = vld [vmem:[%s2071_s1 + $0x168] sm:$0xff]  ;;  %s1196_s8 = sshll.u32 %s2076_s27, 4  ;;  %s1065_s27 = sshll.u32 %s2078_s13, 1 }
   0xd   : > { %374 = vmatpush.msra.mxu2 %v1097_v2  ;;  %v210_v6 = vld [vmem:[%s2071_s1 + $0x60] sm:$0xff]  ;;  %v209_v8 = vld [vmem:[%s2071_s1 + $0x58] sm:$0xff]  ;;  %v1112_v11 = vld [vmem:[%s2071_s1 + $0x1f0] sm:$0xff]  ;;  %s1411_s25 = scalar_lea.vmem %s2070_s0, %s1196_s8  ;;  %s1985_s6 = scalar_lea.vmem %s2072_s2, %s1196_s8 }
   0xe   : > { %1199 = vmatpush.msra.mxu1 %v212_v1  ;;  %215 = vmatpush.msra.mxu0 %v212_v1  ;;  %v1094_v7 = vld [vmem:[%s2071_s1 + $0x160] sm:$0xff]  ;;  %v1113_v9 = vld [vmem:[%s2071_s1 + $0x1f8] sm:$0xff]  ;;  %v208_v12 = vld [vmem:[%s2071_s1 + $0x50] sm:$0xff]  ;;  %s189_s9 = scalar_lea.vmem %s2073_s3, %s1065_s27 }
   0xf   : > { %375 = vmatpush.msra.mxu2 %v1096_v4  ;;  %v1093_v10 = vld [vmem:[%s2071_s1 + $0x158] sm:$0xff]  ;;  %457 = vmatpush.msra.mxu3 %v1113_v9  ;;  %v1092_v13 = vld [vmem:[%s2071_s1 + $0x150] sm:$0xff]  ;;  %v1111_v14 = vld [vmem:[%s2071_s1 + $0x1e8] sm:$0xff] }
  0x10   : > { %1200 = vmatpush.msra.mxu1 %v211_v3  ;;  %216 = vmatpush.msra.mxu0 %v211_v3  ;;  %v207_v15 = vld [vmem:[%s2071_s1 + $0x48] sm:$0xff]  ;;  %v1110_v17 = vld [vmem:[%s2071_s1 + $0x1e0] sm:$0xff]  ;;  %v1109_v20 = vld [vmem:[%s2071_s1 + $0x1d8] sm:$0xff] }
  0x11   : > { %376 = vmatpush.msra.mxu2 %v1095_v5  ;;  %458 = vmatpush.msra.mxu3 %v1112_v11  ;;  %v1091_v16 = vld [vmem:[%s2071_s1 + $0x148] sm:$0xff]  ;;  %v206_v18 = vld [vmem:[%s2071_s1 + $0x40] sm:$0xff]  ;;  %v205_v21 = vld [vmem:[%s2071_s1 + $0x38] sm:$0xff] }
  0x12   : > { %1201 = vmatpush.msra.mxu1 %v210_v6  ;;  %217 = vmatpush.msra.mxu0 %v210_v6  ;;  %v1090_v19 = vld [vmem:[%s2071_s1 + $0x140] sm:$0xff]  ;;  %v1089_v22 = vld [vmem:[%s2071_s1 + $0x138] sm:$0xff]  ;;  %v1108_v23 = vld [vmem:[%s2071_s1 + $0x1d0] sm:$0xff] }
  0x13   : > { %377 = vmatpush.msra.mxu2 %v1094_v7  ;;  %459 = vmatpush.msra.mxu3 %v1111_v14  ;;  %v204_v24 = vld [vmem:[%s2071_s1 + $0x30] sm:$0xff]  ;;  %v1107_v26 = vld [vmem:[%s2071_s1 + $0x1c8] sm:$0xff]  ;;  %v1106_v29 = vld [vmem:[%s2071_s1 + $0x1c0] sm:$0xff] }
  0x14   : > { %1202 = vmatpush.msra.mxu1 %v209_v8  ;;  %218 = vmatpush.msra.mxu0 %v209_v8  ;;  %v1088_v25 = vld [vmem:[%s2071_s1 + $0x130] sm:$0xff]  ;;  %v203_v27 = vld [vmem:[%s2071_s1 + $0x28] sm:$0xff]  ;;  %v202_v30 = vld [vmem:[%s2071_s1 + $0x20] sm:$0xff] }
  0x15   : > { %378 = vmatpush.msra.mxu2 %v1093_v10  ;;  %460 = vmatpush.msra.mxu3 %v1110_v17  ;;  %v1087_v28 = vld [vmem:[%s2071_s1 + $0x128] sm:$0xff]  ;;  %v1086_v31 = vld [vmem:[%s2071_s1 + $0x120] sm:$0xff]  ;;  %v1105_v32 = vld [vmem:[%s2071_s1 + $0x1b8] sm:$0xff] }
  0x16   : > { %1203 = vmatpush.msra.mxu1 %v208_v12  ;;  %219 = vmatpush.msra.mxu0 %v208_v12  ;;  %v201_v33 = vld [vmem:[%s2071_s1 + $0x18] sm:$0xff]  ;;  %v1104_v35 = vld [vmem:[%s2071_s1 + $0x1b0] sm:$0xff]  ;;  %v1103_v38 = vld [vmem:[%s2071_s1 + $0x1a8] sm:$0xff] }
  0x17   : > { %379 = vmatpush.msra.mxu2 %v1092_v13  ;;  %461 = vmatpush.msra.mxu3 %v1109_v20  ;;  %v1085_v34 = vld [vmem:[%s2071_s1 + $0x118] sm:$0xff]  ;;  %v200_v36 = vld [vmem:[%s2071_s1 + $0x10] sm:$0xff]  ;;  %v199_v39 = vld [vmem:[%s2071_s1 + $0x8] sm:$0xff] }
  0x18   : > { %1204 = vmatpush.msra.mxu1 %v207_v15  ;;  %220 = vmatpush.msra.mxu0 %v207_v15  ;;  %v1084_v37 = vld [vmem:[%s2071_s1 + $0x110] sm:$0xff]  ;;  %v1083_v40 = vld [vmem:[%s2071_s1 + $0x108] sm:$0xff]  ;;  %v1102_v41 = vld [vmem:[%s2071_s1 + $0x1a0] sm:$0xff] }
  0x19   : > { %380 = vmatpush.msra.mxu2 %v1091_v16  ;;  %462 = vmatpush.msra.mxu3 %v1108_v23  ;;  %v198_v42 = vld [vmem:[%s2071_s1] sm:$0xff]  ;;  %v1081_v45 = vld [vmem:[%s2071_s1 + $0xf8] sm:$0xff]  ;;  %v1080_v48 = vld [vmem:[%s2071_s1 + $0xf0] sm:$0xff] }
  0x1a   : > { %1205 = vmatpush.msra.mxu1 %v206_v18  ;;  %221 = vmatpush.msra.mxu0 %v206_v18  ;;  %v1423_v43 = vld [vmem:[%s1411_s25 + $0x20] sm:$0xff]  ;;  %v1129_v47 = vld [vmem:[%s2071_s1 + $0x278] sm:$0xff]  ;;  %v1128_v50 = vld [vmem:[%s2071_s1 + $0x270] sm:$0xff] }
  0x1b   : > { %381 = vmatpush.msra.mxu2 %v1090_v19  ;;  %463 = vmatpush.msra.mxu3 %v1107_v26  ;;  %v1426_v44 = vld [vmem:[%s1411_s25] sm:$0xff]  ;;  %v1101_v49 = vld [vmem:[%s2071_s1 + $0x198] sm:$0xff]  ;;  %v1079_v52 = vld [vmem:[%s2071_s1 + $0xe8] sm:$0xff] }
  0x1c   : > { %1206 = vmatpush.msra.mxu1 %v205_v21  ;;  %222 = vmatpush.msra.mxu0 %v205_v21  ;;  %v1082_v46 = vld [vmem:[%s2071_s1 + $0x100] sm:$0xff]  ;;  %v1161_v51 = vld [vmem:[%s2071_s1 + $0x378] sm:$0xff]  ;;  %v1100_v53 = vld [vmem:[%s2071_s1 + $0x190] sm:$0xff] }
  0x1d   : > { %382 = vmatpush.msra.mxu2 %v1089_v22  ;;  %464 = vmatpush.msra.mxu3 %v1106_v29  ;;  %v1127_v54 = vld [vmem:[%s2071_s1 + $0x268] sm:$0xff]  ;;  %v1160_v55 = vld [vmem:[%s2071_s1 + $0x370] sm:$0xff]  ;;  %v1078_v56 = vld [vmem:[%s2071_s1 + $0xe0] sm:$0xff] }
  0x1e   : > { %1207 = vmatpush.msra.mxu1 %v204_v24  ;;  %223 = vmatpush.msra.mxu0 %v204_v24  ;;  %v1099_v57 = vld [vmem:[%s2071_s1 + $0x188] sm:$0xff]  ;;  %v1126_v59 = vld [vmem:[%s2071_s1 + $0x260] sm:$0xff]  ;;  %v1077_v60 = vld [vmem:[%s2071_s1 + $0xd8] sm:$0xff] }
  0x1f   : > { %383 = vmatpush.msra.mxu2 %v1088_v25  ;;  %465 = vmatpush.msra.mxu3 %v1105_v32  ;;  %v1471_v58 = vld [vmem:[%s1411_s25 + $0x28] sm:$0xff]  ;;  %v1125_v62 = vld [vmem:[%s2071_s1 + $0x258] sm:$0xff]  ;;  %v1076_v63 = vld [vmem:[%s2071_s1 + $0xd0] sm:$0xff] }
  0x20   : > { %1208 = vmatpush.msra.mxu1 %v203_v27  ;;  %224 = vmatpush.msra.mxu0 %v203_v27  ;;  %v1480_v61 = vld [vmem:[%s1411_s25 + $0x8] sm:$0xff]  ;;  %v1098_v0 = vld [vmem:[%s2071_s1 + $0x180] sm:$0xff]  ;;  %v1124_v1 = vld [vmem:[%s2071_s1 + $0x250] sm:$0xff] }
  0x21   : > { %384 = vmatpush.msra.mxu2 %v1087_v28  ;;  %466 = vmatpush.msra.mxu3 %v1104_v35  ;;  %v1075_v2 = vld [vmem:[%s2071_s1 + $0xc8] sm:$0xff]  ;;  %v1177_v5 = vld [vmem:[%s2071_s1 + $0x3f8] sm:$0xff]  ;;  %v1074_v6 = vld [vmem:[%s2071_s1 + $0xc0] sm:$0xff] }
  0x22   : > { %1209 = vmatpush.msra.mxu1 %v202_v30  ;;  %225 = vmatpush.msra.mxu0 %v202_v30  ;;  %v1159_v3 = vld [vmem:[%s2071_s1 + $0x368] sm:$0xff]  ;;  %v1158_v7 = vld [vmem:[%s2071_s1 + $0x360] sm:$0xff]  ;;  %v1517_v8 = vld [vmem:[%s1411_s25 + $0x30] sm:$0xff] }
  0x23   : > { %385 = vmatpush.msra.mxu2 %v1086_v31  ;;  %467 = vmatpush.msra.mxu3 %v1103_v38  ;;  %v1123_v4 = vld [vmem:[%s2071_s1 + $0x248] sm:$0xff]  ;;  %v1122_v9 = vld [vmem:[%s2071_s1 + $0x240] sm:$0xff]  ;;  %v1073_v10 = vld [vmem:[%s2071_s1 + $0xb8] sm:$0xff] }
  0x24   : > { %1210 = vmatpush.msra.mxu1 %v201_v33  ;;  %226 = vmatpush.msra.mxu0 %v201_v33  ;;  %v1526_v11 = vld [vmem:[%s1411_s25 + $0x10] sm:$0xff]  ;;  %v1121_v12 = vld [vmem:[%s2071_s1 + $0x238] sm:$0xff]  ;;  %v1071_v16 = vld [vmem:[%s2071_s1 + $0xa8] sm:$0xff] }
  0x25   : > { %386 = vmatpush.msra.mxu2 %v1085_v34  ;;  %468 = vmatpush.msra.mxu3 %v1102_v41  ;;  %v1072_v13 = vld [vmem:[%s2071_s1 + $0xb0] sm:$0xff]  ;;  %v1157_v14 = vld [vmem:[%s2071_s1 + $0x358] sm:$0xff]  ;;  %v1119_v18 = vld [vmem:[%s2071_s1 + $0x228] sm:$0xff] }
  0x26   : > { %1211 = vmatpush.msra.mxu1 %v200_v36  ;;  %227 = vmatpush.msra.mxu0 %v200_v36  ;;  %v1120_v15 = vld [vmem:[%s2071_s1 + $0x230] sm:$0xff]  ;;  %v1070_v20 = vld [vmem:[%s2071_s1 + $0xa0] sm:$0xff]  ;;  %v1175_v21 = vld [vmem:[%s2071_s1 + $0x3e8] sm:$0xff] }
  0x27   : > { %387 = vmatpush.msra.mxu2 %v1084_v37  ;;  %469 = vmatpush.msra.mxu3 %v1101_v49  ;;  %v1176_v17 = vld [vmem:[%s2071_s1 + $0x3f0] sm:$0xff]  ;;  %v1563_v22 = vld [vmem:[%s1411_s25 + $0x38] sm:$0xff]  ;;  %v1118_v23 = vld [vmem:[%s2071_s1 + $0x220] sm:$0xff] }
  0x28   : > { %1212 = vmatpush.msra.mxu1 %v199_v39  ;;  %228 = vmatpush.msra.mxu0 %v199_v39  ;;  %v1156_v19 = vld [vmem:[%s2071_s1 + $0x350] sm:$0xff]  ;;  %v1069_v24 = vld [vmem:[%s2071_s1 + $0x98] sm:$0xff]  ;;  %v1155_v28 = vld [vmem:[%s2071_s1 + $0x348] sm:$0xff] }
  0x29   : > { %388 = vmatpush.msra.mxu2 %v1083_v40  ;;  %470 = vmatpush.msra.mxu3 %v1100_v53  ;;  %v1572_v25 = vld [vmem:[%s1411_s25 + $0x18] sm:$0xff]  ;;  %v1068_v27 = vld [vmem:[%s2071_s1 + $0x90] sm:$0xff]  ;;  %v1067_v30 = vld [vmem:[%s2071_s1 + $0x88] sm:$0xff] }
  0x2a   : > { %1213 = vmatpush.msra.mxu1 %v198_v42  ;;  %229 = vmatpush.msra.mxu0 %v198_v42  ;;  %v1117_v26 = vld [vmem:[%s2071_s1 + $0x218] sm:$0xff]  ;;  %v1116_v29 = vld [vmem:[%s2071_s1 + $0x210] sm:$0xff]  ;;  %v1174_v31 = vld [vmem:[%s2071_s1 + $0x3e0] sm:$0xff] }
  0x2b   : > { %242 = vmatmul.f32.vlgmr.msra.gmra.mxu1 %v1423_v43  ;;  %230 = vmatmul.f32.vlgmr.msra.gmra.mxu0 %v1426_v44  ;;  %v1115_v32 = vld [vmem:[%s2071_s1 + $0x208] sm:$0xff]  ;;  %v1154_v33 = vld [vmem:[%s2071_s1 + $0x340] sm:$0xff]  ;;  %v1173_v35 = vld [vmem:[%s2071_s1 + $0x3d8] sm:$0xff] }
  0x2c   : > { %291 = vmatpush.msrb.mxu1 %v1081_v45  ;;  %389 = vmatpush.msra.mxu2 %v1082_v46  ;;  %v1066_v34 = vld [vmem:[%s2071_s1 + $0x80] sm:$0xff]  ;;  %v1145_v37 = vld [vmem:[%s2071_s1 + $0x2f8] sm:$0xff]  ;;  %v1172_v38 = vld [vmem:[%s2071_s1 + $0x3d0] sm:$0xff] }
  0x2d   : > { %540 = vmatpush.msrb.mxu0 %v1129_v47  ;;  %390 = vmatmul.f32.vlgmr.msra.gmra.mxu2 %v1426_v44  ;;  %v1114_v36 = vld [vmem:[%s2071_s1 + $0x200] sm:$0xff]  ;;  %v1144_v39 = vld [vmem:[%s2071_s1 + $0x2f0] sm:$0xff]  ;;  %v1153_v40 = vld [vmem:[%s2071_s1 + $0x338] sm:$0xff] }
  0x2e   : > { %292 = vmatpush.msrb.mxu1 %v1080_v48  ;;  %689 = vmatpush.msrb.mxu2 %v1161_v51  ;;  %v1628_v41 = vld [vmem:[%s2071_s1 + $0x478] sm:$0xff]  ;;  %v1143_v42 = vld [vmem:[%s2071_s1 + $0x2e8] sm:$0xff]  ;;  %v1152_v45 = vld [vmem:[%s2071_s1 + $0x330] sm:$0xff] }
  0x2f   : > { %541 = vmatpush.msrb.mxu0 %v1128_v50  ;;  %471 = vmatpush.msra.mxu3 %v1099_v57  ;;  %v1171_v46 = vld [vmem:[%s2071_s1 + $0x3c8] sm:$0xff]  ;;  %v1643_v47 = vld [vmem:[%s2071_s1 + $0x470] sm:$0xff]  ;;  %v1142_v48 = vld [vmem:[%s2071_s1 + $0x2e0] sm:$0xff] }
  0x30   : > { %293 = vmatpush.msrb.mxu1 %v1079_v52  ;;  %690 = vmatpush.msrb.mxu2 %v1160_v55  ;;  %v1151_v49 = vld [vmem:[%s2071_s1 + $0x328] sm:$0xff]  ;;  %v1170_v50 = vld [vmem:[%s2071_s1 + $0x3c0] sm:$0xff]  ;;  %v1141_v51 = vld [vmem:[%s2071_s1 + $0x2d8] sm:$0xff] }
  0x31   : > { %542 = vmatpush.msrb.mxu0 %v1127_v54  ;;  %472 = vmatpush.msra.mxu3 %v1098_v0  ;;  %v1663_v52 = vld [vmem:[%s2071_s1 + $0x468] sm:$0xff]  ;;  %v1140_v53 = vld [vmem:[%s2071_s1 + $0x2d0] sm:$0xff]  ;;  %v1150_v54 = vld [vmem:[%s2071_s1 + $0x320] sm:$0xff] }
  0x32   : > { %294 = vmatpush.msrb.mxu1 %v1078_v56  ;;  %473 = vmatmul.f32.vlgmr.msra.gmra.mxu3 %v1426_v44  ;;  %v1676_v55 = vld [vmem:[%s2071_s1 + $0x460] sm:$0xff]  ;;  %v1139_v56 = vld [vmem:[%s2071_s1 + $0x2c8] sm:$0xff]  ;;  %v1169_v57 = vld [vmem:[%s2071_s1 + $0x3b8] sm:$0xff] }
  0x33   : > { %245 = vmatmul.f32.gmra.mxu1 %v1471_v58  ;;  %543 = vmatpush.msrb.mxu0 %v1126_v59  ;;  %v1149_v59 = vld [vmem:[%s2071_s1 + $0x318] sm:$0xff]  ;;  %v1148_v0 = vld [vmem:[%s2071_s1 + $0x310] sm:$0xff] }
  0x34   : > { %295 = vmatpush.msrb.mxu1 %v1077_v60  ;;  %233 = vmatmul.f32.gmra.mxu0 %v1480_v61  ;;  %v1692_v60 = vld [vmem:[%s2071_s1 + $0x458] sm:$0xff] }
  0x35   : > { %544 = vmatpush.msrb.mxu0 %v1125_v62  ;;  %393 = vmatmul.f32.gmra.mxu2 %v1480_v61  ;;  %v1138_v62 = vld [vmem:[%s2071_s1 + $0x2c0] sm:$0xff] }
  0x36   : > { %296 = vmatpush.msrb.mxu1 %v1076_v63  ;;  %691 = vmatpush.msrb.mxu2 %v1159_v3  ;;  %v1168_v63 = vld [vmem:[%s2071_s1 + $0x3b0] sm:$0xff] }
  0x37   : > { %545 = vmatpush.msrb.mxu0 %v1124_v1  ;;  %772 = vmatpush.msrb.mxu3 %v1177_v5  ;;  %v1137_v1 = vld [vmem:[%s2071_s1 + $0x2b8] sm:$0xff]  ;;  %v1136_v3 = vld [vmem:[%s2071_s1 + $0x2b0] sm:$0xff] }
  0x38   : > { %297 = vmatpush.msrb.mxu1 %v1075_v2  ;;  %692 = vmatpush.msrb.mxu2 %v1158_v7  ;;  %v1167_v2 = vld [vmem:[%s2071_s1 + $0x3a8] sm:$0xff]  ;;  %v1188_v5 = vld [vmem:[%s2071_s1 + $0x450] sm:$0xff] }
  0x39   : > { %546 = vmatpush.msrb.mxu0 %v1123_v4  ;;  %773 = vmatpush.msrb.mxu3 %v1176_v17  ;;  %v1147_v4 = vld [vmem:[%s2071_s1 + $0x308] sm:$0xff]  ;;  %v1132_v17 = vld [vmem:[%s2071_s1 + $0x290] sm:$0xff] }
  0x3a   : > { %298 = vmatpush.msrb.mxu1 %v1074_v6  ;;  %693 = vmatpush.msrb.mxu2 %v1157_v14  ;;  %v1146_v6 = vld [vmem:[%s2071_s1 + $0x300] sm:$0xff]  ;;  %v1135_v7 = vld [vmem:[%s2071_s1 + $0x2a8] sm:$0xff]  ;;  %v1133_v14 = vld [vmem:[%s2071_s1 + $0x298] sm:$0xff] }
  0x3b   : > { %248 = vmatmul.f32.gmra.mxu1 %v1517_v8  ;;  %547 = vmatpush.msrb.mxu0 %v1122_v9  ;;  %v1166_v9 = vld [vmem:[%s2071_s1 + $0x3a0] sm:$0xff] }
  0x3c   : > { %299 = vmatpush.msrb.mxu1 %v1073_v10  ;;  %236 = vmatmul.f32.gmra.mxu0 %v1526_v11  ;;  %v1187_v10 = vld [vmem:[%s2071_s1 + $0x448] sm:$0xff] }
  0x3d   : > { %548 = vmatpush.msrb.mxu0 %v1121_v12  ;;  %396 = vmatmul.f32.gmra.mxu2 %v1526_v11  ;;  %v1134_v12 = vld [vmem:[%s2071_s1 + $0x2a0] sm:$0xff] }
  0x3e   : > { %300 = vmatpush.msrb.mxu1 %v1072_v13  ;;  %476 = vmatmul.f32.gmra.mxu3 %v1480_v61  ;;  %v1165_v13 = vld [vmem:[%s2071_s1 + $0x398] sm:$0xff] }
  0x3f   : > { %549 = vmatpush.msrb.mxu0 %v1120_v15  ;;  %694 = vmatpush.msrb.mxu2 %v1156_v19  ;;  %v1186_v15 = vld [vmem:[%s2071_s1 + $0x440] sm:$0xff]  ;;  %v1163_v19 = vld [vmem:[%s2071_s1 + $0x388] sm:$0xff] }
  0x40   : > { %301 = vmatpush.msrb.mxu1 %v1071_v16  ;;  %774 = vmatpush.msrb.mxu3 %v1175_v21  ;;  %v1164_v16 = vld [vmem:[%s2071_s1 + $0x390] sm:$0xff]  ;;  %v1131_v21 = vld [vmem:[%s2071_s1 + $0x288] sm:$0xff] }
  0x41   : > { %550 = vmatpush.msrb.mxu0 %v1119_v18  ;;  %695 = vmatpush.msrb.mxu2 %v1155_v28  ;;  %v1185_v18 = vld [vmem:[%s2071_s1 + $0x438] sm:$0xff] }
  0x42   : > { %302 = vmatpush.msrb.mxu1 %v1070_v20  ;;  %775 = vmatpush.msrb.mxu3 %v1174_v31  ;;  %v1184_v20 = vld [vmem:[%s2071_s1 + $0x430] sm:$0xff]  ;;  %v1181_v28 = vld [vmem:[%s2071_s1 + $0x418] sm:$0xff]  ;;  %v1178_v31 = vld [vmem:[%s2071_s1 + $0x400] sm:$0xff] }
  0x43   : > { %251 = vmatmul.f32.gmra.mxu1 %v1563_v22  ;;  %551 = vmatpush.msrb.mxu0 %v1118_v23  ;;  %v1162_v23 = vld [vmem:[%s2071_s1 + $0x380] sm:$0xff] }
  0x44   : > { %303 = vmatpush.msrb.mxu1 %v1069_v24  ;;  %239 = vmatmul.f32.gmra.mxu0 %v1572_v25  ;;  %v1183_v24 = vld [vmem:[%s2071_s1 + $0x428] sm:$0xff] }
  0x45   : > { %552 = vmatpush.msrb.mxu0 %v1117_v26  ;;  %399 = vmatmul.f32.gmra.mxu2 %v1572_v25  ;;  %v1130_v26 = vld [vmem:[%s2071_s1 + $0x280] sm:$0xff] }
  0x46   : > { %304 = vmatpush.msrb.mxu1 %v1068_v27  ;;  %479 = vmatmul.f32.gmra.mxu3 %v1526_v11  ;;  %v1182_v27 = vld [vmem:[%s2071_s1 + $0x420] sm:$0xff] }
  0x47   : > { %553 = vmatpush.msrb.mxu0 %v1116_v29  ;;  %696 = vmatpush.msrb.mxu2 %v1154_v33  ;;  %v1180_v29 = vld [vmem:[%s2071_s1 + $0x410] sm:$0xff] }
  0x48   : > { %305 = vmatpush.msrb.mxu1 %v1067_v30  ;;  %776 = vmatpush.msrb.mxu3 %v1173_v35  ;;  %v1179_v30 = vld [vmem:[%s2071_s1 + $0x408] sm:$0xff] }
  0x49   : > { %554 = vmatpush.msrb.mxu0 %v1115_v32  ;;  %697 = vmatpush.msrb.mxu2 %v1153_v40  ;;  %v263_v32 = vlaneseq }
  0x4a   : > { %306 = vmatpush.msrb.mxu1 %v1066_v34  ;;  %777 = vmatpush.msrb.mxu3 %v1172_v38 }
  0x4b   : > { %307 = vmatmul.f32.vlgmr.msrb.gmra.mxu1 %v1426_v44  ;;  %555 = vmatpush.msrb.mxu0 %v1114_v36  ;;  %v1833_v33 = vshrl.u32 %v263_v32, 7 }
  0x4c   : > { %606 = vmatpush.msra.mxu1 %v1145_v37  ;;  %556 = vmatmul.f32.vlgmr.msrb.gmra.mxu0 %v1426_v44 }
  0x4d   : > { %402 = vmatmul.f32.gmra.mxu2 %v1423_v43  ;;  %855 = vmatpush.msra.mxu0 %v1628_v41  ;;  %vm265_vm0 = vcmp.lt.s32.totalorder %v1833_v33, 4  ;;  %vm423_vm1 = vcmp.lt.s32.totalorder %v1833_v33, 2  ;;  %vm340_vm2 = vcmp.lt.s32.totalorder %v1833_v33, 3  ;;  %vm506_vm3 = vcmp.lt.s32.totalorder %v1833_v33, 1 }
  0x4e   : > { %607 = vmatpush.msra.mxu1 %v1144_v39  ;;  %482 = vmatmul.f32.gmra.mxu3 %v1572_v25  ;;  %vm655_vm4 = vcmp.lt.s32.totalorder %v1833_v33, 7  ;;  %vm738_vm5 = vcmp.lt.s32.totalorder %v1833_v33, 6  ;;  %vm821_vm6 = vcmp.lt.s32.totalorder %v1833_v33, 5 }
  0x4f   : > { %698 = vmatpush.msrb.mxu2 %v1152_v45  ;;  %778 = vmatpush.msrb.mxu3 %v1171_v46 }
  0x50   : > { %608 = vmatpush.msra.mxu1 %v1143_v42  ;;  %856 = vmatpush.msra.mxu0 %v1643_v47 }
  0x51   : > { %699 = vmatpush.msrb.mxu2 %v1151_v49  ;;  %779 = vmatpush.msrb.mxu3 %v1170_v50 }
  0x52   : > { %609 = vmatpush.msra.mxu1 %v1142_v48  ;;  %857 = vmatpush.msra.mxu0 %v1663_v52 }
  0x53   : > { %310 = vmatmul.f32.gmra.mxu1 %v1480_v61  ;;  %700 = vmatpush.msrb.mxu2 %v1150_v54 }
  0x54   : > { %559 = vmatmul.f32.gmra.mxu0 %v1480_v61  ;;  %610 = vmatpush.msra.mxu1 %v1141_v51 }
  0x55   : > { %405 = vmatmul.f32.gmra.mxu2 %v1471_v58  ;;  %858 = vmatpush.msra.mxu0 %v1676_v55 }
  0x56   : > { %611 = vmatpush.msra.mxu1 %v1140_v53  ;;  %485 = vmatmul.f32.gmra.mxu3 %v1423_v43 }
  0x57   : > { %780 = vmatpush.msrb.mxu3 %v1169_v57  ;;  %701 = vmatpush.msrb.mxu2 %v1149_v59 }
  0x58   : > { %612 = vmatpush.msra.mxu1 %v1139_v56  ;;  %859 = vmatpush.msra.mxu0 %v1692_v60 }
  0x59   : > { %781 = vmatpush.msrb.mxu3 %v1168_v63  ;;  %702 = vmatpush.msrb.mxu2 %v1148_v0 }
  0x5a   : > { %613 = vmatpush.msra.mxu1 %v1138_v62  ;;  %860 = vmatpush.msra.mxu0 %v1188_v5 }
  0x5b   : > { %313 = vmatmul.f32.gmra.mxu1 %v1526_v11  ;;  %782 = vmatpush.msrb.mxu3 %v1167_v2 }
  0x5c   : > { %562 = vmatmul.f32.gmra.mxu0 %v1526_v11  ;;  %614 = vmatpush.msra.mxu1 %v1137_v1 }
  0x5d   : > { %408 = vmatmul.f32.gmra.mxu2 %v1517_v8  ;;  %783 = vmatpush.msrb.mxu3 %v1166_v9 }
  0x5e   : > { %615 = vmatpush.msra.mxu1 %v1136_v3  ;;  %703 = vmatpush.msrb.mxu2 %v1147_v4 }
  0x5f   : > { %488 = vmatmul.f32.gmra.mxu3 %v1471_v58  ;;  %861 = vmatpush.msra.mxu0 %v1187_v10 }
  0x60   : > { %704 = vmatpush.msrb.mxu2 %v1146_v6  ;;  %616 = vmatpush.msra.mxu1 %v1135_v7 }
  0x61   : > { %784 = vmatpush.msrb.mxu3 %v1165_v13  ;;  %862 = vmatpush.msra.mxu0 %v1186_v15 }
  0x62   : > { %617 = vmatpush.msra.mxu1 %v1134_v12  ;;  %1214 = vmatpush.msra.mxu2 %v1628_v41 }
  0x63   : > { %316 = vmatmul.f32.gmra.mxu1 %v1572_v25  ;;  %785 = vmatpush.msrb.mxu3 %v1164_v16 }
  0x64   : > { %565 = vmatmul.f32.gmra.mxu0 %v1572_v25  ;;  %618 = vmatpush.msra.mxu1 %v1133_v14 }
  0x65   : > { %411 = vmatmul.f32.gmra.mxu2 %v1563_v22  ;;  %863 = vmatpush.msra.mxu0 %v1185_v18 }
  0x66   : > { %619 = vmatpush.msra.mxu1 %v1132_v17  ;;  %786 = vmatpush.msrb.mxu3 %v1163_v19 }
  0x67   : > { %491 = vmatmul.f32.gmra.mxu3 %v1517_v8  ;;  %1215 = vmatpush.msra.mxu2 %v1643_v47 }
  0x68   : > { %864 = vmatpush.msra.mxu0 %v1184_v20  ;;  %620 = vmatpush.msra.mxu1 %v1131_v21 }
  0x69   : > { %787 = vmatpush.msrb.mxu3 %v1162_v23  ;;  %1216 = vmatpush.msra.mxu2 %v1663_v52 }
  0x6a   : > { %865 = vmatpush.msra.mxu0 %v1183_v24  ;;  %621 = vmatpush.msra.mxu1 %v1130_v26 }
  0x6b   : > { %319 = vmatmul.f32.gmra.mxu1 %v1423_v43  ;;  %1217 = vmatpush.msra.mxu2 %v1676_v55 }
  0x6c   : > { %568 = vmatmul.f32.gmra.mxu0 %v1423_v43 }
  0x6d   : > { %705 = vmatmul.f32.vlgmr.msrb.gmra.mxu2 %v1426_v44  ;;  %866 = vmatpush.msra.mxu0 %v1182_v27 }
  0x6e   : > { %1218 = vmatpush.msra.mxu2 %v1692_v60 }
  0x6f   : > { %494 = vmatmul.f32.gmra.mxu3 %v1563_v22  ;;  %867 = vmatpush.msra.mxu0 %v1181_v28 }
  0x70   : > { %1219 = vmatpush.msra.mxu2 %v1188_v5 }
  0x71   : > { %868 = vmatpush.msra.mxu0 %v1180_v29 }
  0x72   : > { %1220 = vmatpush.msra.mxu2 %v1187_v10 }
  0x73   : > { %322 = vmatmul.f32.gmra.mxu1 %v1471_v58  ;;  %869 = vmatpush.msra.mxu0 %v1179_v30 }
  0x74   : > { %571 = vmatmul.f32.gmra.mxu0 %v1471_v58  ;;  %1221 = vmatpush.msra.mxu2 %v1186_v15 }
  0x75   : > { %708 = vmatmul.f32.gmra.mxu2 %v1480_v61  ;;  %870 = vmatpush.msra.mxu0 %v1178_v31 }
  0x76   : > { %1222 = vmatpush.msra.mxu2 %v1185_v18 }
  0x77   : > { %788 = vmatmul.f32.vlgmr.msrb.gmra.mxu3 %v1426_v44 }
  0x78   : > { %1223 = vmatpush.msra.mxu2 %v1184_v20 }
  0x7a   : > { %1224 = vmatpush.msra.mxu2 %v1183_v24 }
  0x7b   : > { %325 = vmatmul.f32.gmra.mxu1 %v1517_v8 }
  0x7c   : > { %574 = vmatmul.f32.gmra.mxu0 %v1517_v8  ;;  %1225 = vmatpush.msra.mxu2 %v1182_v27 }
  0x7d   : > { %711 = vmatmul.f32.gmra.mxu2 %v1526_v11 }
  0x7e   : > { %1226 = vmatpush.msra.mxu2 %v1181_v28 }
  0x7f   : > { %791 = vmatmul.f32.gmra.mxu3 %v1480_v61 }
  0x80   : > { %1227 = vmatpush.msra.mxu2 %v1180_v29 }
  0x82   : > { %1228 = vmatpush.msra.mxu2 %v1179_v30 }
  0x83   : > { %328 = vmatmul.f32.gmra.mxu1 %v1563_v22 }
  0x84   : > { %577 = vmatmul.f32.gmra.mxu0 %v1563_v22  ;;  %1229 = vmatpush.msra.mxu2 %v1178_v31 }
  0x85   : > { %714 = vmatmul.f32.gmra.mxu2 %v1572_v25 }
  0x87   : > { %794 = vmatmul.f32.gmra.mxu3 %v1526_v11 }
  0x8b   : > { %622 = vmatmul.f32.vlgmr.msra.gmra.mxu1 %v1426_v44 }
  0x8c   : > { %871 = vmatmul.f32.vlgmr.msra.gmra.mxu0 %v1426_v44 }
  0x8d   : > { %717 = vmatmul.f32.gmra.mxu2 %v1423_v43 }
  0x8f   : > { %797 = vmatmul.f32.gmra.mxu3 %v1572_v25 }
  0x93   : > { %625 = vmatmul.f32.gmra.mxu1 %v1480_v61 }
  0x94   : > { %874 = vmatmul.f32.gmra.mxu0 %v1480_v61 }
  0x95   : > { %720 = vmatmul.f32.gmra.mxu2 %v1471_v58 }
  0x97   : > { %800 = vmatmul.f32.gmra.mxu3 %v1423_v43 }
  0x9b   : > { %628 = vmatmul.f32.gmra.mxu1 %v1526_v11 }
  0x9c   : > { %877 = vmatmul.f32.gmra.mxu0 %v1526_v11 }
  0x9d   : > { %723 = vmatmul.f32.gmra.mxu2 %v1517_v8 }
  0x9f   : > { %803 = vmatmul.f32.gmra.mxu3 %v1471_v58 }
  0xa3   : > { %631 = vmatmul.f32.gmra.mxu1 %v1572_v25 }
  0xa4   : > { %880 = vmatmul.f32.gmra.mxu0 %v1572_v25 }
  0xa5   : > { %726 = vmatmul.f32.gmra.mxu2 %v1563_v22 }
  0xa7   : > { %806 = vmatmul.f32.gmra.mxu3 %v1517_v8 }
  0xa8   : > { %v243_v44 = vpop.f32.mrf.mxu1  ;;  %v231_v61 = vpop.f32.mrf.mxu0 }
  0xa9   : > { %v255_v11 = vrot.slane %v231_v61, 4  ;;  %v257_v35 = vrot.slane %v243_v44, 4 }
  0xab   : > { %634 = vmatmul.f32.gmra.mxu1 %v1423_v43 }
  0xac   : > { %883 = vmatmul.f32.gmra.mxu0 %v1423_v43 }
  0xad   : > { %889 = vmatmul.f32.vlgmr.msra.gmra.mxu2 %v1517_v8 }
  0xaf   : > { %809 = vmatmul.f32.gmra.mxu3 %v1563_v22 }
  0xb0   : > { %v246_v34 = vpop.f32.mrf.mxu1  ;;  %v391_v25 = vpop.f32.mrf.mxu2 }
  0xb1   : > { %v261_v36 = vrot.slane %v246_v34, 4  ;;  %v234_v37 = vpop.f32.mrf.mxu0  ;;  %v415_v42 = vrot.slane %v391_v25, 6 }
  0xb2   : > { %v259_v38 = vrot.slane %v234_v37, 4 }
  0xb3   : > { %v1841_v39 = vsel %vm265_vm0, %v257_v35, %v261_v36  ;;  %v1845_v43 = vsel %vm265_vm0, %v261_v36, %v257_v35  ;;  %637 = vmatmul.f32.gmra.mxu1 %v1471_v58 }
  0xb4   : > { %v266_v40 = vsel %vm265_vm0, %v255_v11, %v259_v38  ;;  %v270_v41 = vsel %vm265_vm0, %v259_v38, %v255_v11  ;;  %886 = vmatmul.f32.gmra.mxu0 %v1471_v58 }
  0xb5   : > { %892 = vmatmul.f32.gmra.mxu2 %v1563_v22  ;;  %v474_v49 = vpop.f32.mrf.mxu3 }
  0xb6   : > { %v498_v15 = vrot.slane %v474_v49, 7 }
  0xb8   : > { %v249_v45 = vpop.f32.mrf.mxu1  ;;  %v394_v46 = vpop.f32.mrf.mxu2 }
  0xb9   : > { %v237_v47 = vpop.f32.mrf.mxu0  ;;  %v419_v48 = vrot.slane %v394_v46, 6  ;;  %v258_v54 = vrot.slane %v249_v45, 4 }
  0xba   : > { %v256_v52 = vrot.slane %v237_v47, 4 }
  0xbb   : > { %640 = vmatmul.f32.gmra.mxu1 %v1517_v8  ;;  %v424_v50 = vsel %vm423_vm1, %v415_v42, %v419_v48  ;;  %v428_v51 = vsel %vm423_vm1, %v419_v48, %v415_v42 }
  0xc0   : > { %v252_v58 = vpop.f32.mrf.mxu1  ;;  %v397_v53 = vpop.f32.mrf.mxu2 }
  0xc1   : > { %v262_v55 = vrot.slane %v252_v58, 4  ;;  %v240_v56 = vpop.f32.mrf.mxu0  ;;  %v477_v59 = vpop.f32.mrf.mxu3  ;;  %v416_v0 = vrot.slane %v397_v53, 6 }
  0xc2   : > { %v260_v57 = vrot.slane %v240_v56, 4  ;;  %v502_v16 = vrot.slane %v477_v59, 7 }
  0xc3   : > { %v1862_v60 = vsel %vm265_vm0, %v258_v54, %v262_v55  ;;  %v1866_v8 = vsel %vm265_vm0, %v262_v55, %v258_v54  ;;  %643 = vmatmul.f32.gmra.mxu1 %v1563_v22 }
  0xc4   : > { %v267_v62 = vsel %vm265_vm0, %v256_v52, %v260_v57  ;;  %v271_v63 = vsel %vm265_vm0, %v260_v57, %v256_v52  ;;  %v511_v24 = vsel %vm506_vm3, %v502_v16, %v498_v15  ;;  %v507_v27 = vsel %vm506_vm3, %v498_v15, %v502_v16 }
  0xc8   : > { %v308_v1 = vpop.f32.mrf.mxu1  ;;  %v400_v2 = vpop.f32.mrf.mxu2 }
  0xc9   : > { %v420_v3 = vrot.slane %v400_v2, 6  ;;  %v557_v4 = vpop.f32.mrf.mxu0  ;;  %v480_v5 = vpop.f32.mrf.mxu3  ;;  %v332_v10 = vrot.slane %v308_v1, 5 }
  0xca   : > { %v499_v42 = vrot.slane %v480_v5, 7 }
  0xcb   : > { %v425_v6 = vsel %vm423_vm1, %v416_v0, %v420_v3  ;;  %v429_v7 = vsel %vm423_vm1, %v420_v3, %v416_v0 }
  0xd0   : > { %v311_v9 = vpop.f32.mrf.mxu1  ;;  %v403_v22 = vpop.f32.mrf.mxu2 }
  0xd1   : > { %v336_v12 = vrot.slane %v311_v9, 5  ;;  %v1878_v13 = vpop.f32.mrf.mxu0  ;;  %v483_v14 = vpop.f32.mrf.mxu3  ;;  %v417_v26 = vrot.slane %v403_v22, 6 }
  0xd2   : > { %v503_v45 = vrot.slane %v483_v14, 7 }
  0xd3   : > { %v341_v17 = vsel %vm340_vm2, %v332_v10, %v336_v12  ;;  %v345_v18 = vsel %vm340_vm2, %v336_v12, %v332_v10 }
  0xd4   : > { %v349_v19 = vadd.f32 %v345_v18, %v270_v41  ;;  %v350_v20 = vadd.f32 %v341_v17, %v266_v40  ;;  %v512_v52 = vsel %vm506_vm3, %v503_v45, %v499_v42  ;;  %v508_v53 = vsel %vm506_vm3, %v499_v42, %v503_v45 }
  0xd6   : > { %v432_v21 = vadd.f32 %v428_v51, %v349_v19  ;;  %v433_v23 = vadd.f32 %v424_v50, %v350_v20 }
  0xd8   : > { %v1889_v28 = vadd.f32 %v507_v27, %v433_v23  ;;  %v314_v29 = vpop.f32.mrf.mxu1  ;;  %v406_v30 = vpop.f32.mrf.mxu2  ;;  %v515_v31 = vadd.f32 %v511_v24, %v432_v21 }
  0xd9   : > { %v421_v44 = vrot.slane %v406_v30, 6  ;;  %v563_v61 = vpop.f32.mrf.mxu0  ;;  %v486_v32 = vpop.f32.mrf.mxu3  ;;  %v333_v37 = vrot.slane %v314_v29, 5 }
  0xda   : > { %v1891_v11 = vadd.f32 %v557_v4, %v515_v31  ;;  %v500_v22 = vrot.slane %v486_v32, 7 }
  0xdb   : > { %v426_v34 = vsel %vm423_vm1, %v417_v26, %v421_v44  ;;  %v430_v25 = vsel %vm423_vm1, %v421_v44, %v417_v26 }
  0xe0   : > { %v317_v35 = vpop.f32.mrf.mxu1  ;;  %v409_v36 = vpop.f32.mrf.mxu2 }
  0xe1   : > { %v337_v38 = vrot.slane %v317_v35, 5  ;;  %v1897_v40 = vpop.f32.mrf.mxu0  ;;  %v418_v58 = vrot.slane %v409_v36, 6 }
  0xe2   : > { %v489_v41 = vpop.f32.mrf.mxu3 }
  0xe3   : > { %v342_v46 = vsel %vm340_vm2, %v333_v37, %v337_v38  ;;  %v346_v47 = vsel %vm340_vm2, %v337_v38, %v333_v37  ;;  %v504_v10 = vrot.slane %v489_v41, 7 }
  0xe4   : > { %v351_v48 = vadd.f32 %v346_v47, %v271_v63  ;;  %v352_v49 = vadd.f32 %v342_v46, %v267_v62 }
  0xe5   : > { %v513_v19 = vsel %vm506_vm3, %v504_v10, %v500_v22  ;;  %v509_v20 = vsel %vm506_vm3, %v500_v22, %v504_v10 }
  0xe6   : > { %v434_v50 = vadd.f32 %v429_v7, %v351_v48  ;;  %v435_v51 = vadd.f32 %v425_v6, %v352_v49 }
  0xe8   : > { %v1907_v54 = vadd.f32 %v508_v53, %v435_v51  ;;  %v320_v55 = vpop.f32.mrf.mxu1  ;;  %v412_v56 = vpop.f32.mrf.mxu2  ;;  %v517_v57 = vadd.f32 %v512_v52, %v434_v50 }
  0xe9   : > { %v422_v59 = vrot.slane %v412_v56, 6  ;;  %v569_v0 = vpop.f32.mrf.mxu0  ;;  %v334_v5 = vrot.slane %v320_v55, 5 }
  0xea   : > { %v492_v1 = vpop.f32.mrf.mxu3  ;;  %v1909_v2 = vadd.f32 %v563_v61, %v517_v57 }
  0xeb   : > { %v427_v62 = vsel %vm423_vm1, %v418_v58, %v422_v59  ;;  %v431_v63 = vsel %vm423_vm1, %v422_v59, %v418_v58  ;;  %v501_v32 = vrot.slane %v492_v1, 7 }
  0xf0   : > { %v323_v3 = vpop.f32.mrf.mxu1  ;;  %v1915_v4 = vpop.f32.mrf.mxu2 }
  0xf1   : > { %v338_v6 = vrot.slane %v323_v3, 5  ;;  %v1917_v7 = vpop.f32.mrf.mxu0  ;;  %v730_v53 = vrot.slane %v1915_v4, 2 }
  0xf2   : > { %v495_v9 = vpop.f32.mrf.mxu3 }
  0xf3   : > { %v343_v12 = vsel %vm340_vm2, %v334_v5, %v338_v6  ;;  %v347_v14 = vsel %vm340_vm2, %v338_v6, %v334_v5 }
  0xf4   : > { %v353_v15 = vadd.f32 %v347_v14, %v1845_v43  ;;  %v354_v16 = vadd.f32 %v343_v12, %v1841_v39 }
  0xf6   : > { %v436_v17 = vadd.f32 %v430_v25, %v353_v15  ;;  %v437_v18 = vadd.f32 %v426_v34, %v354_v16  ;;  %v505_v34 = vrot.slane %v495_v9, 7 }
  0xf8   : > { %v1929_v21 = vadd.f32 %v509_v20, %v437_v18  ;;  %v326_v23 = vpop.f32.mrf.mxu1  ;;  %v709_v24 = vpop.f32.mrf.mxu2  ;;  %v519_v26 = vadd.f32 %v513_v19, %v436_v17  ;;  %v514_v45 = vsel %vm506_vm3, %v505_v34, %v501_v32  ;;  %v510_v46 = vsel %vm506_vm3, %v501_v32, %v505_v34 }
  0xf9   : > { %v575_v27 = vpop.f32.mrf.mxu0  ;;  %v335_v39 = vrot.slane %v326_v23, 5  ;;  %v734_v55 = vrot.slane %v709_v24, 2 }
  0xfa   : > { %v789_v29 = vpop.f32.mrf.mxu3  ;;  %v1931_v30 = vadd.f32 %v569_v0, %v519_v26  ;;  %v582_v0 = vadd.f32 %v1878_v13, %v1889_v28 }
  0xfb   : > { %v813_v1 = vrot.slane %v789_v29, 3  ;;  %v739_v13 = vsel %vm738_vm5, %v730_v53, %v734_v55  ;;  %v743_v28 = vsel %vm738_vm5, %v734_v55, %v730_v53 }
 0x100   : > { %v329_v43 = vpop.f32.mrf.mxu1  ;;  %v1933_v31 = vpop.f32.mrf.mxu2 }
 0x101   : > { %v339_v44 = vrot.slane %v329_v43, 5  ;;  %v1935_v61 = vpop.f32.mrf.mxu0  ;;  %v731_v32 = vrot.slane %v1933_v31, 2 }
 0x102   : > { %v792_v38 = vpop.f32.mrf.mxu3 }
 0x103   : > { %v344_v25 = vsel %vm340_vm2, %v335_v39, %v339_v44  ;;  %v348_v35 = vsel %vm340_vm2, %v339_v44, %v335_v39 }
 0x104   : > { %v355_v36 = vadd.f32 %v348_v35, %v1866_v8  ;;  %v356_v37 = vadd.f32 %v344_v25, %v1862_v60 }
 0x106   : > { %v438_v41 = vadd.f32 %v431_v63, %v355_v36  ;;  %v439_v42 = vadd.f32 %v427_v62, %v356_v37  ;;  %v817_v62 = vrot.slane %v792_v38, 3  ;;  %v584_v37 = vadd.f32 %v1897_v40, %v1907_v54 }
 0x108   : > { %v1947_v47 = vadd.f32 %v510_v46, %v439_v42  ;;  %v623_v48 = vpop.f32.mrf.mxu1  ;;  %v1949_v49 = vpop.f32.mrf.mxu2  ;;  %v521_v50 = vadd.f32 %v514_v45, %v438_v41  ;;  %v822_v12 = vsel %vm821_vm6, %v813_v1, %v817_v62  ;;  %v826_v14 = vsel %vm821_vm6, %v817_v62, %v813_v1 }
 0x109   : > { %v872_v51 = vpop.f32.mrf.mxu0  ;;  %v647_v56 = vrot.slane %v623_v48, 1  ;;  %v735_v34 = vrot.slane %v1949_v49, 2 }
 0x10a   : > { %v1951_v52 = vadd.f32 %v575_v27, %v521_v50  ;;  %v1953_v8 = vpop.f32.mrf.mxu3  ;;  %v896_v63 = vrot.slane %v872_v51, 4 }
 0x10b   : > { %v814_v38 = vrot.slane %v1953_v8, 3  ;;  %v740_v40 = vsel %vm738_vm5, %v731_v32, %v735_v34  ;;  %v744_v54 = vsel %vm738_vm5, %v735_v34, %v731_v32 }
 0x110   : > { %v626_v60 = vpop.f32.mrf.mxu1  ;;  %v1956_v58 = vpop.f32.mrf.mxu2 }
 0x111   : > { %v651_v57 = vrot.slane %v626_v60, 1  ;;  %v875_v59 = vpop.f32.mrf.mxu0 }
 0x112   : > { %v900_v6 = vrot.slane %v875_v59, 4  ;;  %v798_v19 = vpop.f32.mrf.mxu3 }
 0x113   : > { %v656_v3 = vsel %vm655_vm4, %v647_v56, %v651_v57  ;;  %v660_v5 = vsel %vm655_vm4, %v651_v57, %v647_v56  ;;  %v818_v41 = vrot.slane %v798_v19, 3 }
 0x114   : > { %v664_v4 = vadd.f32 %v656_v3, %v1891_v11  ;;  %v665_v9 = vadd.f32 %v660_v5, %v582_v0  ;;  %v904_v15 = vsel %vm265_vm0, %v896_v63, %v900_v6  ;;  %v908_v11 = vsel %vm265_vm0, %v900_v6, %v896_v63 }
 0x115   : > { %v823_v53 = vsel %vm821_vm6, %v814_v38, %v818_v41  ;;  %v827_v55 = vsel %vm821_vm6, %v818_v41, %v814_v38 }
 0x116   : > { %v747_v22 = vadd.f32 %v739_v13, %v664_v4  ;;  %v748_v10 = vadd.f32 %v743_v28, %v665_v9 }
 0x118   : > { %v830_v16 = vadd.f32 %v822_v12, %v747_v22  ;;  %v831_v17 = vadd.f32 %v826_v14, %v748_v10  ;;  %v629_v18 = vpop.f32.mrf.mxu1  ;;  %v1987_v26 = vpop.f32.mrf.mxu2  ;;  %v732_v12 = vrot.slane %v1956_v58, 2 }
 0x119   : > { %v878_v20 = vpop.f32.mrf.mxu0  ;;  %v648_v25 = vrot.slane %v629_v18, 1  ;;  %v736_v14 = vrot.slane %v1987_v26, 2 }
 0x11a   : > { %v912_v23 = vadd.f32 %v904_v15, %v830_v16  ;;  %v913_v24 = vadd.f32 %v908_v11, %v831_v17  ;;  %v801_v42 = vpop.f32.mrf.mxu3  ;;  %v897_v45 = vrot.slane %v878_v20, 4  ;;  %v586_v17 = vadd.f32 %v1917_v7, %v1929_v21 }
 0x11b   : > { %v815_v18 = vrot.slane %v801_v42, 3  ;;  %v741_v26 = vsel %vm738_vm5, %v732_v12, %v736_v14  ;;  %v745_v7 = vsel %vm738_vm5, %v736_v14, %v732_v12 }
 0x11c   : > { %920 = vst [vmem:[%s1985_s6] sm:$0xff] %v912_v23  ;;  %v928_v27 = vadd.f32 %v913_v24, %v912_v23  ;;  %v941_v29 = vmul.f32 %v912_v23, %v912_v23  ;;  %v942_v43 = vmul.f32 %v913_v24, %v913_v24 }
 0x11d   : > { %921 = vst [vmem:[%s1985_s6 + $0x8] sm:$0xff] %v913_v24 }
 0x11e   : > { %v949_v39 = vadd.f32 %v942_v43, %v941_v29 }
 0x120   : > { %v632_v44 = vpop.f32.mrf.mxu1  ;;  %v2001_v51 = vpop.f32.mrf.mxu2 }
 0x121   : > { %v652_v35 = vrot.slane %v632_v44, 1  ;;  %v881_v36 = vpop.f32.mrf.mxu0 }
 0x122   : > { %v901_v31 = vrot.slane %v881_v36, 4  ;;  %v804_v6 = vpop.f32.mrf.mxu3 }
 0x123   : > { %v657_v46 = vsel %vm655_vm4, %v648_v25, %v652_v35  ;;  %v661_v48 = vsel %vm655_vm4, %v652_v35, %v648_v25  ;;  %v819_v19 = vrot.slane %v804_v6, 3 }
 0x124   : > { %v666_v49 = vadd.f32 %v657_v46, %v1909_v2  ;;  %v667_v50 = vadd.f32 %v661_v48, %v584_v37  ;;  %v905_v2 = vsel %vm265_vm0, %v897_v45, %v901_v31  ;;  %v909_v56 = vsel %vm265_vm0, %v901_v31, %v897_v45 }
 0x125   : > { %v824_v44 = vsel %vm821_vm6, %v815_v18, %v819_v19  ;;  %v828_v32 = vsel %vm821_vm6, %v819_v19, %v815_v18 }
 0x126   : > { %v749_v8 = vadd.f32 %v740_v40, %v666_v49  ;;  %v750_v60 = vadd.f32 %v744_v54, %v667_v50  ;;  %v733_v54 = vrot.slane %v2001_v51, 2 }
 0x128   : > { %v832_v57 = vadd.f32 %v823_v53, %v749_v8  ;;  %v833_v59 = vadd.f32 %v827_v55, %v750_v60  ;;  %v635_v0 = vpop.f32.mrf.mxu1  ;;  %v727_v28 = vpop.f32.mrf.mxu2  ;;  %v588_v55 = vadd.f32 %v1935_v61, %v1947_v47 }
 0x129   : > { %v884_v1 = vpop.f32.mrf.mxu0  ;;  %v649_v15 = vrot.slane %v635_v0, 1  ;;  %v737_v8 = vrot.slane %v727_v28, 2 }
 0x12a   : > { %v914_v62 = vadd.f32 %v905_v2, %v832_v57  ;;  %v915_v63 = vadd.f32 %v909_v56, %v833_v59  ;;  %v898_v20 = vrot.slane %v884_v1, 4 }
 0x12b   : > { %v742_v51 = vsel %vm738_vm5, %v733_v54, %v737_v8 }
 0x12c   : > { %922 = vst [vmem:[%s1985_s6 + $0x10] sm:$0xff] %v914_v62  ;;  %v929_v3 = vadd.f32 %v928_v27, %v914_v62  ;;  %v943_v5 = vmul.f32 %v914_v62, %v914_v62  ;;  %v944_v9 = vmul.f32 %v915_v63, %v915_v63 }
 0x12d   : > { %923 = vst [vmem:[%s1985_s6 + $0x18] sm:$0xff] %v915_v63 }
 0x12e   : > { %v930_v4 = vadd.f32 %v929_v3, %v915_v63  ;;  %v950_v13 = vadd.f32 %v949_v39, %v943_v5  ;;  %v807_v39 = vpop.f32.mrf.mxu3  ;;  %v746_v63 = vsel %vm738_vm5, %v737_v8, %v733_v54 }
 0x12f   : > { %v816_v56 = vrot.slane %v807_v39, 3 }
 0x130   : > { %v951_v22 = vadd.f32 %v950_v13, %v944_v9  ;;  %v638_v10 = vpop.f32.mrf.mxu1  ;;  %v890_v36 = vpop.f32.mrf.mxu2 }
 0x131   : > { %v653_v11 = vrot.slane %v638_v10, 1  ;;  %v887_v16 = vpop.f32.mrf.mxu0  ;;  %v899_v61 = vrot.slane %v890_v36, 4 }
 0x132   : > { %v902_v27 = vrot.slane %v887_v16, 4 }
 0x133   : > { %v658_v23 = vsel %vm655_vm4, %v649_v15, %v653_v11  ;;  %v662_v24 = vsel %vm655_vm4, %v653_v11, %v649_v15 }
 0x134   : > { %v668_v58 = vadd.f32 %v658_v23, %v1931_v30  ;;  %v669_v29 = vadd.f32 %v662_v24, %v586_v17  ;;  %v906_v30 = vsel %vm265_vm0, %v898_v20, %v902_v27  ;;  %v910_v34 = vsel %vm265_vm0, %v902_v27, %v898_v20 }
 0x136   : > { %v751_v21 = vadd.f32 %v741_v26, %v668_v58  ;;  %v752_v43 = vadd.f32 %v745_v7, %v669_v29  ;;  %v810_v50 = vpop.f32.mrf.mxu3 }
 0x137   : > { %v820_v57 = vrot.slane %v810_v50, 3 }
 0x138   : > { %v834_v25 = vadd.f32 %v824_v44, %v751_v21  ;;  %v835_v35 = vadd.f32 %v828_v32, %v752_v43  ;;  %v641_v37 = vpop.f32.mrf.mxu1  ;;  %v893_v2 = vpop.f32.mrf.mxu2 }
 0x139   : > { %v650_v60 = vrot.slane %v641_v37, 1  ;;  %v903_v47 = vrot.slane %v893_v2, 4  ;;  %v825_v6 = vsel %vm821_vm6, %v816_v56, %v820_v57 }
 0x13a   : > { %v916_v38 = vadd.f32 %v906_v30, %v834_v25  ;;  %v917_v41 = vadd.f32 %v910_v34, %v835_v35 }
 0x13b   : > { %v907_v13 = vsel %vm265_vm0, %v899_v61, %v903_v47  ;;  %v911_v28 = vsel %vm265_vm0, %v903_v47, %v899_v61 }
 0x13c   : > { %924 = vst [vmem:[%s1985_s6 + $0x20] sm:$0xff] %v916_v38  ;;  %v931_v42 = vadd.f32 %v930_v4, %v916_v38  ;;  %v945_v45 = vmul.f32 %v916_v38, %v916_v38  ;;  %v946_v48 = vmul.f32 %v917_v41, %v917_v41  ;;  %v829_v4 = vsel %vm821_vm6, %v820_v57, %v816_v56 }
 0x13d   : > { %925 = vst [vmem:[%s1985_s6 + $0x28] sm:$0xff] %v917_v41 }
 0x13e   : > { %v932_v46 = vadd.f32 %v931_v42, %v917_v41  ;;  %v952_v31 = vadd.f32 %v951_v22, %v945_v45 }
 0x140   : > { %v953_v49 = vadd.f32 %v952_v31, %v946_v48  ;;  %v644_v40 = vpop.f32.mrf.mxu1 }
 0x141   : > { %v654_v53 = vrot.slane %v644_v40, 1 }
 0x143   : > { %v659_v59 = vsel %vm655_vm4, %v650_v60, %v654_v53  ;;  %v663_v0 = vsel %vm655_vm4, %v654_v53, %v650_v60 }
 0x144   : > { %v670_v1 = vadd.f32 %v659_v59, %v1951_v52  ;;  %v671_v62 = vadd.f32 %v663_v0, %v588_v55 }
 0x146   : > { %v753_v3 = vadd.f32 %v742_v51, %v670_v1  ;;  %v754_v5 = vadd.f32 %v746_v63, %v671_v62 }
 0x148   : > { %v836_v52 = vadd.f32 %v825_v6, %v753_v3  ;;  %v837_v9 = vadd.f32 %v829_v4, %v754_v5 }
 0x14a   : > { %v918_v22 = vadd.f32 %v907_v13, %v836_v52  ;;  %v919_v10 = vadd.f32 %v911_v28, %v837_v9 }
 0x14c   : > { %926 = vst [vmem:[%s1985_s6 + $0x30] sm:$0xff] %v918_v22  ;;  %v933_v12 = vadd.f32 %v932_v46, %v918_v22  ;;  %v947_v14 = vmul.f32 %v918_v22, %v918_v22  ;;  %v948_v11 = vmul.f32 %v919_v10, %v919_v10 }
 0x14d   : > { %927 = vst [vmem:[%s1985_s6 + $0x38] sm:$0xff] %v919_v10 }
 0x14e   : > { %v934_v15 = vadd.f32 %v933_v12, %v919_v10  ;;  %v954_v16 = vadd.f32 %v953_v49, %v947_v14 }
 0x150   : > { %v935_v17 = vrot.slane %v934_v15, 4  ;;  %v955_v18 = vadd.f32 %v954_v16, %v948_v11 }
 0x152   : > { %v936_v19 = vadd.f32 %v935_v17, %v934_v15  ;;  %v956_v20 = vrot.slane %v955_v18, 4 }
 0x154   : > { %v937_v23 = vrot.slane %v936_v19, 2  ;;  %v957_v24 = vadd.f32 %v956_v20, %v955_v18 }
 0x156   : > { %v938_v33 = vadd.f32 %v937_v23, %v936_v19  ;;  %v958_v27 = vrot.slane %v957_v24, 2 }
 0x158   : > { %v939_v58 = vrot.slane %v938_v33, 1  ;;  %v959_v29 = vadd.f32 %v958_v27, %v957_v24 }
 0x15a   : > { %v960_v26 = vrot.slane %v959_v29, 1  ;;  %v940_v7 = vadd.f32 %v939_v58, %v938_v33 }
 0x15c   : > { %v961_v21 = vadd.f32 %v960_v26, %v959_v29 }
 0x15e   : > { %v963_v43 = vsel %vm962_vm7, %v940_v7, %v961_v21 }
 0x15f   : > { %964 = vst [vmem:[%s189_s9] sm:$0x3] %v963_v43 }
 0x160 PF: > { %s14_s12 = sadd.s32 1, %s1244_s12  }
 0x161   : > { %p11_p5 = scmp.ge.s32.totalorder %s14_s12, 4  }
 0x163   :  { %13 = sbr.rel (!%p11_p5) target bundleno = 1 (0x1), region = 78 }

</bundles_post_ra>
